<compile_context>
chip_gen: v5e
topology: v5e:2x2
jax: 0.10.0
libtpu: 0.0.40
codegen_flags: <defaults>
</compile_context>

<pallas_src>
import functools

import jax
import jax.numpy as jnp
from jax.experimental import pallas as pl
from jax.experimental.pallas import tpu as pltpu


def _round_up(a, b):
    return ((a + b - 1) // b) * b


def _device_kind():
    try:
        return jax.devices()[0].device_kind.lower()
    except Exception:
        return ""


def _pick_row_tile(Ho, Wo, ct, target_m, acc_budget_bytes=4 << 20):
    """Rows per output tile.

    Aim for M = TH*Wo >= target_m (fills the MXU rows and amortizes the
    ~0.35us/step grid overhead) while bounding the f32 accumulator.  Prefer a
    divisor of Ho so no padded tail rows are needed; otherwise keep the target
    tile and pad Ho up (never fall back to TH = Ho for odd Ho).
    """
    th = max(1, -(-target_m // Wo))                        # ceil(target_m / Wo)
    th_budget = max(1, acc_budget_bytes // max(1, Wo * ct * 4))
    th = max(1, min(th, Ho, th_budget))
    divs = [d for d in range(1, Ho + 1) if Ho % d == 0]
    near = [d for d in divs if th <= d <= 2 * th]
    if near:
        return min(near)                                   # smallest divisor >= target
    under = [d for d in divs if d <= th]
    if under and under[-1] * 2 >= th:
        return under[-1]
    return th                                              # pad Ho up to a multiple


def _conv_bn_act_kernel(x_ref, w_ref, scale_ref, bias_ref, out_ref,
                        *, K, stride, TH, Wo, has_act, use_tap_loop):
    """Computes one (batch, cout-tile, output-row-tile) block.

    x_ref:     (1, Hp, Wp, Cin)  full padded image for this batch (bf16),
                                 resident across the inner grid axes
    w_ref:     (K*K*Cin, CT)     im2col-reshaped weight tile (bf16)
    scale_ref: (1, CT)           folded BatchNorm scale (f32)
    bias_ref:  (1, CT)           folded BatchNorm bias  (f32)
    out_ref:   (1, TH, Wo, CT)
    """
    Cin = x_ref.shape[-1]
    CT = out_ref.shape[-1]
    MT = TH * Wo
    row0 = pl.multiple_of(pl.program_id(2) * (TH * stride), TH * stride)

    def strided_tap(x_slab, kh, kw):
        return jax.lax.slice(
            x_slab, (kh, kw, 0),
            (kh + (TH - 1) * stride + 1, kw + (Wo - 1) * stride + 1, Cin),
            (stride, stride, 1))

    if use_tap_loop:
        # Large Cin: per-tap (MT, Cin) x (Cin, CT) matmuls accumulated in f32.
        # Avoids materializing the K*K-duplicated im2col patch matrix (which
        # saturates vld slots / vregs before the MXU); each tap is read
        # straight from the resident VMEM image.
        x_slab = None
        if stride != 1:
            hin = (TH - 1) * stride + K
            x_slab = x_ref[0, pl.ds(row0, hin), :, :]
        acc = jnp.zeros((MT, CT), jnp.float32)
        for kh in range(K):
            for kw in range(K):
                if stride == 1:
                    p = x_ref[0, pl.ds(row0 + kh, TH), pl.ds(kw, Wo), :]
                else:
                    p = strided_tap(x_slab, kh, kw)
                tap = kh * K + kw
                acc = acc + jnp.dot(p.reshape(MT, Cin),
                                    w_ref[pl.ds(tap * Cin, Cin), :],
                                    preferred_element_type=jnp.float32)
    else:
        # Small Cin: concatenate the K*K shifted patches along channels and do
        # one (MT, K*K*Cin) x (K*K*Cin, CT) MXU matmul.
        # TODO(synk): space-to-depth repack for stem layers (Cin < 128) so the
        # lanes are dense instead of 4/128 occupied.
        hin = (TH - 1) * stride + K
        x_slab = x_ref[0, pl.ds(row0, hin), :, :]
        patches = [strided_tap(x_slab, kh, kw)
                   for kh in range(K) for kw in range(K)]
        pm = jnp.concatenate(patches, axis=-1).reshape(MT, K * K * Cin)
        acc = jnp.dot(pm, w_ref[...], preferred_element_type=jnp.float32)

    # Fused BatchNorm (per-channel scale/bias) + ReLU, in f32.
    y = acc * scale_ref[...] + bias_ref[...]
    if has_act:
        y = jnp.maximum(y, 0.0)
    out_ref[...] = y.reshape(1, TH, Wo, CT).astype(out_ref.dtype)


def conv_bn_act_block(x_nchw, weight_oihw, bn_scale, bn_bias, *,
                      stride=1, padding=1, groups=1, has_act=True,
                      cout_tile=None, target_rows_m=None, out_dtype=None,
                      tap_loop_min_cin=256):
    """Pallas implementation of ConvBnActBlock.forward (inference BN).

    x_nchw:      (N, Cin, H, W)      float32
    weight_oihw: (Cout, Cin, K, K)   PyTorch Conv2d weight layout
    bn_scale:    (Cout,)             gamma / sqrt(running_var + eps)
                                     (or ones if has_bn=False)
    bn_bias:     (Cout,)             beta - running_mean * bn_scale
                                     (or the conv bias if has_bn=False)
    returns      (N, Cout, Ho, Wo)   NCHW, matching the PyTorch module
    """
    assert groups == 1, "TODO(synk): grouped convolution (groups>1) not implemented"
    N, Cin, H, W = x_nchw.shape
    Cout, Cin_w, K, K2 = weight_oihw.shape
    assert Cin_w == Cin and K == K2
    if out_dtype is None:
        out_dtype = x_nchw.dtype

    # ---- per-generation tile defaults ----
    kind = _device_kind()
    is_v5e = ("v5 lite" in kind) or ("v5e" in kind) or ("v5lite" in kind)
    is_v7 = ("v7" in kind) or ("tpu7" in kind) or ("7x" in kind)
    if cout_tile is None:
        cout_tile = 128 if is_v5e else 256      # 256 fills the v6e/v7x MXU width
    if target_rows_m is None:
        target_rows_m = 256 if is_v5e else 512  # MXU row fill / overhead amortization

    # ---- layout / padding glue (NCHW module interface -> NHWC kernel) ----
    # TODO(synk): keep activations NHWC + bf16 end-to-end across the backbone
    # and fold the halo into the kernel (masked loads) to remove these
    # wrapper-side transpose/pad/cast full-tensor HBM round-trips.
    x = jnp.transpose(x_nchw, (0, 2, 3, 1))               # NHWC
    Hp, Wp = H + 2 * padding, W + 2 * padding
    Ho = (Hp - K) // stride + 1
    Wo = (Wp - K) // stride + 1

    # Lane-dense Cout tile, capped at the 128-padded Cout.
    Cout_128 = _round_up(Cout, 128)
    CT = min(cout_tile, Cout_128)
    Cout_p = _round_up(Cout, CT)
    n_co = Cout_p // CT

    # Output-row tiling (bounds the f32 accumulator / VMEM working set, gives
    # the pipeliner and the second v7x TensorCore parallel work).
    TH = _pick_row_tile(Ho, Wo, CT, target_rows_m)
    Ho_p = _round_up(Ho, TH)
    n_ho = Ho_p // TH

    # Pad the input: conv halo plus extra bottom rows for the padded-Ho tiles
    # (the extra output rows are garbage and sliced off below).
    Hp_needed = (Ho_p - 1) * stride + K
    pad_bottom = padding + max(0, Hp_needed - Hp)
    x = jnp.pad(x, ((0, 0), (padding, pad_bottom), (padding, padding), (0, 0)))
    Hp_pad = H + padding + pad_bottom

    # im2col weight: (Cout, Cin, K, K) -> (K*K*Cin, Cout_p), tap-major order
    # matching the patch / tap indexing in the kernel.
    w = jnp.transpose(weight_oihw, (2, 3, 1, 0)).reshape(K * K * Cin, Cout)
    w = jnp.pad(w, ((0, 0), (0, Cout_p - Cout)))
    scale = jnp.pad(bn_scale.astype(jnp.float32),
                    (0, Cout_p - Cout)).reshape(1, Cout_p)
    bias = jnp.pad(bn_bias.astype(jnp.float32),
                   (0, Cout_p - Cout)).reshape(1, Cout_p)

    # bf16 matmul inputs; accumulation and BN/ReLU stay in f32 in the kernel.
    x = x.astype(jnp.bfloat16)
    w = w.astype(jnp.bfloat16)

    use_tap_loop = Cin >= tap_loop_min_cin

    # Per-layer VMEM budget (double-buffered image/weight/output + in-kernel
    # working set), clamped to the chip's usable scoped VMEM.
    out_itemsize = jnp.dtype(out_dtype).itemsize
    work_bytes = TH * Wo * CT * 4                          # f32 accumulator
    if use_tap_loop:
        work_bytes += TH * Wo * Cin * 2                    # one tap in flight
    else:
        work_bytes += TH * Wo * K * K * Cin * 2            # im2col patch matrix
    vmem_est = (2 * Hp_pad * Wp * Cin * 2                  # resident image x2 buf
                + 2 * K * K * Cin * CT * 2                 # weight tile x2 buf
                + 2 * 2 * CT * 4 * 2                       # scale + bias x2 buf
                + 2 * TH * Wo * CT * out_itemsize          # output tile x2 buf
                + work_bytes
                + (4 << 20))                               # headroom
    vmem_cap = (56 << 20) if is_v7 else (100 << 20)
    vmem_limit = int(min(max(vmem_est, 32 << 20), vmem_cap))

    kernel = functools.partial(_conv_bn_act_kernel, K=K, stride=stride, TH=TH,
                               Wo=Wo, has_act=has_act, use_tap_loop=use_tap_loop)

    out_nhwc = pl.pallas_call(
        kernel,
        out_shape=jax.ShapeDtypeStruct((N, Ho_p, Wo, Cout_p), out_dtype),
        grid_spec=pltpu.PrefetchScalarGridSpec(
            num_scalar_prefetch=0,
            # Row axis innermost: each weight/scale/bias tile is DMA'd once per
            # (n, co) instead of once per (n, co, ho); the image block index
            # depends only on n, so it stays VMEM-resident across inner axes.
            grid=(N, n_co, n_ho),
            in_specs=[
                # TODO(synk): on v7x (64 MiB VMEM/TC) single-buffer this
                # resident image (pipeline_mode=pl.Buffered(1)) or row-tile it
                # with a manual halo DMA for very large early layers.
                pl.BlockSpec((1, Hp_pad, Wp, Cin),
                             lambda n, co, ho: (n, 0, 0, 0)),
                pl.BlockSpec((K * K * Cin, CT), lambda n, co, ho: (0, co)),
                pl.BlockSpec((1, CT), lambda n, co, ho: (0, co)),
                pl.BlockSpec((1, CT), lambda n, co, ho: (0, co)),
            ],
            out_specs=pl.BlockSpec((1, TH, Wo, CT),
                                   lambda n, co, ho: (n, ho, 0, co)),
        ),
        compiler_params=pltpu.CompilerParams(
            dimension_semantics=("parallel", "parallel", "arbitrary"),
            vmem_limit_bytes=vmem_limit),
    )(x, w, scale, bias)

    if Ho_p != Ho or Cout_p != Cout:
        out_nhwc = out_nhwc[:, :Ho, :, :Cout]              # drop Ho/Cout padding
    return jnp.transpose(out_nhwc, (0, 3, 1, 2))           # back to NCHW


if __name__ == "__main__":
    eps = 1e-5

    def reference(x, weight, bn_scale, bn_bias, *, stride, padding, has_act):
        # Same math as the kernel: bf16 inputs, f32 accumulate, f32 BN + ReLU.
        x_bf = x.astype(jnp.bfloat16).astype(jnp.float32)
        w_bf = weight.astype(jnp.bfloat16).astype(jnp.float32)
        ref = jax.lax.conv_general_dilated(
            x_bf, w_bf, (stride, stride),
            [(padding, padding), (padding, padding)],
            dimension_numbers=("NCHW", "OIHW", "NCHW"),
            precision=jax.lax.Precision.HIGHEST)
        ref = ref * bn_scale[None, :, None, None] + bn_bias[None, :, None, None]
        if has_act:
            ref = jnp.maximum(ref, 0.0)
        return ref

    def run_case(N, Cin, H, W, Cout, K, stride, padding, tol):
        key = jax.random.PRNGKey(0)
        k_x, k_w, k_g, k_b, k_m, k_v = jax.random.split(key, 6)
        x = jax.random.normal(k_x, (N, Cin, H, W), jnp.float32)
        weight = jax.random.normal(k_w, (Cout, Cin, K, K), jnp.float32) * 0.1
        gamma = 1.0 + 0.1 * jax.random.normal(k_g, (Cout,), jnp.float32)
        beta = 0.1 * jax.random.normal(k_b, (Cout,), jnp.float32)
        running_mean = 0.1 * jax.random.normal(k_m, (Cout,), jnp.float32)
        running_var = jnp.abs(jax.random.normal(k_v, (Cout,), jnp.float32)) + 0.5

        # Fold inference-mode BatchNorm into per-channel scale/bias.
        bn_scale = gamma / jnp.sqrt(running_var + eps)
        bn_bias = beta - running_mean * bn_scale

        out = conv_bn_act_block(x, weight, bn_scale, bn_bias,
                                stride=stride, padding=padding, has_act=True)
        out = jax.block_until_ready(out)
        ref = reference(x, weight, bn_scale, bn_bias,
                        stride=stride, padding=padding, has_act=True)

        Ho = (H + 2 * padding - K) // stride + 1
        Wo = (W + 2 * padding - K) // stride + 1
        assert out.shape == (N, Cout, Ho, Wo), out.shape
        err = float(jnp.max(jnp.abs(out - ref)))
        assert jnp.allclose(out, ref, atol=tol, rtol=tol), err

    # ConvBnActBlock(inplanes=4, planes=8, kernel_size=3, stride=1, padding=1,
    #                groups=1, has_bn=True, has_act=True): small-Cin im2col path.
    run_case(N=2, Cin=4, H=16, W=16, Cout=8, K=3, stride=1, padding=1, tol=2e-3)
    # Larger-Cin layer: exercises the per-tap matmul path.
    run_case(N=2, Cin=256, H=8, W=8, Cout=16, K=3, stride=1, padding=1, tol=1e-2)

    print("KERNEL_OK")
</pallas_src>

<mosaic_0001>
module attributes {stable_mosaic.version = 11 : i64} {
  func.func @_conv_bn_act_kernel(%arg0: i32, %arg1: i32, %arg2: i32, %arg3: memref<1x18x18x4xbf16, #tpu.memory_space<vmem>>, %arg4: memref<36x128xbf16, #tpu.memory_space<vmem>>, %arg5: memref<1x128xf32, #tpu.memory_space<vmem>>, %arg6: memref<1x128xf32, #tpu.memory_space<vmem>>, %arg7: memref<1x16x16x128xf32, #tpu.memory_space<vmem>>) attributes {dimension_semantics = [#tpu.dimension_semantics<parallel>, #tpu.dimension_semantics<parallel>, #tpu.dimension_semantics<arbitrary>], iteration_bounds = array<i64: 2, 1, 1>, scalar_prefetch = 0 : i64, scratch_operands = 0 : i64, tpu.core_type = #tpu.core_type<tc>, window_params = [{transform_indices = @transform_0, window_bounds = array<i64: 1, 18, 18, 4>}, {transform_indices = @transform_1, window_bounds = array<i64: 36, 128>}, {transform_indices = @transform_2, window_bounds = array<i64: 1, 128>}, {transform_indices = @transform_3, window_bounds = array<i64: 1, 128>}, {transform_indices = @transform_4, window_bounds = array<i64: 1, 16, 16, 128>}]} {
    %c16_i32 = arith.constant 16 : i32
    %0 = arith.muli %arg2, %c16_i32 : i32
    %1 = tpu.assume_multiple %0, 16 : i32
    %c0 = arith.constant 0 : index
    %2 = arith.index_cast %1 : i32 to index
    %c0_0 = arith.constant 0 : index
    %c0_1 = arith.constant 0 : index
    %3 = vector.load %arg3[%c0, %2, %c0_0, %c0_1] : memref<1x18x18x4xbf16, #tpu.memory_space<vmem>>, vector<1x18x18x4xbf16>
    %4 = vector.shape_cast %3 : vector<1x18x18x4xbf16> to vector<18x18x4xbf16>
    %5 = vector.extract_strided_slice %4 {offsets = [0, 0, 0], sizes = [16, 16, 4], strides = [1, 1, 1]} : vector<18x18x4xbf16> to vector<16x16x4xbf16>
    %6 = vector.extract_strided_slice %4 {offsets = [0, 1, 0], sizes = [16, 16, 4], strides = [1, 1, 1]} : vector<18x18x4xbf16> to vector<16x16x4xbf16>
    %7 = vector.extract_strided_slice %4 {offsets = [0, 2, 0], sizes = [16, 16, 4], strides = [1, 1, 1]} : vector<18x18x4xbf16> to vector<16x16x4xbf16>
    %8 = vector.extract_strided_slice %4 {offsets = [1, 0, 0], sizes = [16, 16, 4], strides = [1, 1, 1]} : vector<18x18x4xbf16> to vector<16x16x4xbf16>
    %9 = vector.extract_strided_slice %4 {offsets = [1, 1, 0], sizes = [16, 16, 4], strides = [1, 1, 1]} : vector<18x18x4xbf16> to vector<16x16x4xbf16>
    %10 = vector.extract_strided_slice %4 {offsets = [1, 2, 0], sizes = [16, 16, 4], strides = [1, 1, 1]} : vector<18x18x4xbf16> to vector<16x16x4xbf16>
    %11 = vector.extract_strided_slice %4 {offsets = [2, 0, 0], sizes = [16, 16, 4], strides = [1, 1, 1]} : vector<18x18x4xbf16> to vector<16x16x4xbf16>
    %12 = vector.extract_strided_slice %4 {offsets = [2, 1, 0], sizes = [16, 16, 4], strides = [1, 1, 1]} : vector<18x18x4xbf16> to vector<16x16x4xbf16>
    %13 = vector.extract_strided_slice %4 {offsets = [2, 2, 0], sizes = [16, 16, 4], strides = [1, 1, 1]} : vector<18x18x4xbf16> to vector<16x16x4xbf16>
    %14 = tpu.concatenate %5, %6, %7, %8, %9, %10, %11, %12, %13 in 2 : vector<16x16x4xbf16>, vector<16x16x4xbf16>, vector<16x16x4xbf16>, vector<16x16x4xbf16>, vector<16x16x4xbf16>, vector<16x16x4xbf16>, vector<16x16x4xbf16>, vector<16x16x4xbf16>, vector<16x16x4xbf16> -> vector<16x16x36xbf16>
    %15 = vector.shape_cast %14 : vector<16x16x36xbf16> to vector<256x36xbf16>
    %c0_2 = arith.constant 0 : index
    %c0_3 = arith.constant 0 : index
    %16 = vector.load %arg4[%c0_2, %c0_3] : memref<36x128xbf16, #tpu.memory_space<vmem>>, vector<36x128xbf16>
    %cst = arith.constant dense<0.000000e+00> : vector<256x128xf32>
    %17 = tpu.matmul %15, %16, %cst {dimension_numbers = #tpu.dot_dimension_numbers<[1], [0], [0], [1], [0, 0, 1, 1], [], []>} : vector<256x36xbf16>, vector<36x128xbf16>, vector<256x128xf32> -> vector<256x128xf32>
    %c0_4 = arith.constant 0 : index
    %c0_5 = arith.constant 0 : index
    %18 = vector.load %arg5[%c0_4, %c0_5] : memref<1x128xf32, #tpu.memory_space<vmem>>, vector<1x128xf32>
    %19 = vector.broadcast %18 : vector<1x128xf32> to vector<256x128xf32>
    %20 = arith.mulf %17, %19 : vector<256x128xf32>
    %c0_6 = arith.constant 0 : index
    %c0_7 = arith.constant 0 : index
    %21 = vector.load %arg6[%c0_6, %c0_7] : memref<1x128xf32, #tpu.memory_space<vmem>>, vector<1x128xf32>
    %22 = vector.broadcast %21 : vector<1x128xf32> to vector<256x128xf32>
    %23 = arith.addf %20, %22 : vector<256x128xf32>
    %cst_8 = arith.constant 0.000000e+00 : f32
    %24 = vector.broadcast %cst_8 : f32 to vector<256x128xf32>
    %25 = arith.maximumf %23, %24 : vector<256x128xf32>
    %26 = vector.shape_cast %25 : vector<256x128xf32> to vector<1x16x16x128xf32>
    %c0_9 = arith.constant 0 : index
    %c0_10 = arith.constant 0 : index
    %c0_11 = arith.constant 0 : index
    %c0_12 = arith.constant 0 : index
    %27 = vector.load %arg7[%c0_9, %c0_10, %c0_11, %c0_12] : memref<1x16x16x128xf32, #tpu.memory_space<vmem>>, vector<1x16x16x128xf32>
    tpu.vector_store %arg7[%c0_9, %c0_10, %c0_11, %c0_12], %26 {strides = array<i32>} : memref<1x16x16x128xf32, #tpu.memory_space<vmem>>, vector<1x16x16x128xf32>,
    return
  }
  func.func @transform_0(%arg0: i32, %arg1: i32, %arg2: i32) -> (i32, i32, i32, i32) {
    %c0_i32 = arith.constant 0 : i32
    %c0_i32_0 = arith.constant 0 : i32
    %c0_i32_1 = arith.constant 0 : i32
    %c0_i32_2 = arith.constant 0 : i32
    return %arg0, %c0_i32, %c0_i32_0, %c0_i32_1 : i32, i32, i32, i32
  }
  func.func @transform_1(%arg0: i32, %arg1: i32, %arg2: i32) -> (i32, i32) {
    %c0_i32 = arith.constant 0 : i32
    %c0_i32_0 = arith.constant 0 : i32
    return %c0_i32, %arg1 : i32, i32
  }
  func.func @transform_2(%arg0: i32, %arg1: i32, %arg2: i32) -> (i32, i32) {
    %c0_i32 = arith.constant 0 : i32
    %c0_i32_0 = arith.constant 0 : i32
    return %c0_i32, %arg1 : i32, i32
  }
  func.func @transform_3(%arg0: i32, %arg1: i32, %arg2: i32) -> (i32, i32) {
    %c0_i32 = arith.constant 0 : i32
    %c0_i32_0 = arith.constant 0 : i32
    return %c0_i32, %arg1 : i32, i32
  }
  func.func @transform_4(%arg0: i32, %arg1: i32, %arg2: i32) -> (i32, i32, i32, i32) {
    %c0_i32 = arith.constant 0 : i32
    %c0_i32_0 = arith.constant 0 : i32
    return %arg0, %arg2, %c0_i32, %arg1 : i32, i32, i32, i32
  }
}

</mosaic_0001>

<bundles_post_ra>
// kernel: tpu_custom_call.1
= control target key start
LH: loop header
LB: loop body
LE: loop exit
PB: predicated region body
PF: predicated region fallthrough
CT: control target
= control target key end

     0   :  { %9 = vsyncpa [#allocation3], 0  ;;  %s2998_s0 = inlined_call_operand.vmem [shape: bf16[2,18,18,4], index: 0, kind: input, shape index: {}]   ;;  %s2999_s1 = inlined_call_operand.vmem [shape: bf16[36,128], index: 1, kind: input, shape index: {}]   ;;  %s3000_s2 = inlined_call_operand.vmem [shape: f32[1,128], index: 2, kind: input, shape index: {}]   ;;  %s3001_s3 = inlined_call_operand.vmem [shape: f32[1,128], index: 3, kind: input, shape index: {}]   ;;  %s3002_s4 = inlined_call_operand.hbm [shape: f32[2,16,16,128], index: 4, kind: output, shape index: {}]  }
   0x1   :  { %11 = vsyncpa [#allocation3 + $0x1], 0  ;;  %s2003_s15 = smov 0   ;;  %s2005_s16 = smov 0  }
   0x2   :  { %s2007_s17 = smov 0   ;;  %s2009_s18 = smov 0  }
   0x3   :  { %s2011_s19 = smov 0   ;;  %s2013_s20 = smov 0  }
   0x4 LB: > { %s1680_s21 = sadd.s32 4294967295, %s1967_s20   ;;  %s1681_s22 = sadd.s32 4294967294, %s1967_s20   ;;  %s1967_s20 = sphi %s2013_s20, %s17_s20   ;;  %s1963_s19 = sphi %s2011_s19, %s3021_s19   ;;  %s1959_s18 = sphi %s2009_s18, %s3020_s18   ;;  %s1955_s17 = sphi %s2007_s17, %s3019_s17   ;;  %s1951_s16 = sphi %s2005_s16, %s3018_s16   ;;  %s1947_s15 = sphi %s2003_s15, %s3017_s15  }
   0x5   : > { %s36_s23 = sadd.s32 1, %s1963_s19  ;;  %s151_s24 = sadd.s32 1, %s1955_s17 }
   0x6   : > { %p38_p0 = scmp.ge.s32.totalorder %s36_s23, 2  ;;  %p161_p1 = scmp.ne.s32.totalorder %s1955_s17, %s1951_s16 }
   0x7   : > { %p162_p2 = scmp.eq.s32.totalorder %s1680_s21, 1  ;;  %p167_p3 = scmp.ne.s32.totalorder %s1951_s16, %s1947_s15 }
   0x8   : > { %s3023_s23 = smov (%p38_p0, %s36_s23), 0  ;;  %p168_p5 = scmp.eq.s32.totalorder %s1681_s22, 1 }
   0x9   : > { %p2043_p4 = por %p162_p2, %p161_p1  ;;  %s144_s26 = ssub.s32 %s1963_s19, %s3023_s23 }
   0xa   : > { %p1687_p6 = scmp.ge.s32.totalorder %s1967_s20, 1  ;;  %p149_p7 = scmp.eq.s32.totalorder %s144_s26, 0 }
   0xb   : > { %p2050_p8 = por %p168_p5, %p167_p3  ;;  %p213_p9 = scmp.lt.s32.totalorder %s1967_s20, 3 }
   0xc   : > { %s2056_s28 = scalar_select %p149_p7, %s1955_s17, %s151_s24  }
   0xd   : > { %p214_p10 = pnand %p1687_p6, %p213_p9 }
   0xf   : > { %217 = sbr.rel (%p214_p10) target bundleno = 634 (0x27a), region = 36 }
  0x14   : > { %p249_p11 = scmp.lt.s32.totalorder %s1959_s18, 1  ;;  %vm452_vm0 = vsmask.f32 7424  ;;  %s1969_s8 = smov 4   ;;  %vm677_vm1 = vcmask 1046528   ;;  %vm1029_vm2 = vcmask 64512  }
  0x15   : > { %s1970_s9 = smov 8   ;;  %s1971_s10 = smov 12   ;;  %vm996_vm3 = vcmask 31744   ;;  %vm1062_vm4 = vcmask 97280   ;;  %vm1313_vm5 = vcmask 1041408   ;;  %vm1095_vm6 = vcmask 130048  }
  0x16   : > { %s250_s29 = scalar_select %p249_p11, %s1959_s18, 1  ;;  %vm1128_vm7 = vcmask 162816   ;;  %vm1161_vm8 = vcmask 195584   ;;  %vm1194_vm9 = vcmask 228352   ;;  %vm1227_vm10 = vcmask 261120  }
  0x17   : > { %s1972_s11 = smov 16   ;;  %s1973_s12 = smov 24   ;;  %vm1280_vm11 = vcmask 293888  }
  0x18   : > { %s1821_s30 = smul.u32 216, %s250_s29  ;;  %s1974_s13 = smov 20  }
  0x19   : > { %s1975_s14 = smov 28   ;;  %s1976_s21 = smov 32  }
  0x1a   : > { %s2063_s7 = scalar_lea.vmem %s2998_s0, %s1821_s30 }
  0x1b   : > { %v2066_v0 = vld [vmem:[%s2063_s7 + $0x30] sm:$0xff]  ;;  %v284_v1 = vld [vmem:[%s2063_s7 + $0x38] sm:$0x1]  ;;  %v278_v4 = vld [vmem:[%s2063_s7 + $0x20] sm:$0x1] }
  0x1c   : > { %v2070_v2 = vld [vmem:[%s2063_s7 + $0x18] sm:$0xff]  ;;  %v424_v3 = vunpack.c.l.b16 %v284_v1  ;;  %v2074_v5 = vld [vmem:[%s2063_s7] sm:$0xff]  ;;  %v272_v6 = vld [vmem:[%s2063_s7 + $0x8] sm:$0x1]  ;;  %v502_v7 = vshrl.u32 %v2066_v0, 16  ;;  %v504_v8 = vshll.u32 %v2066_v0, 16  ;;  %v422_v9 = vunpack.c.l.b16 %v278_v4 }
  0x1d   : > { %v478_v10 = vshrl.u32 %v2070_v2, 16  ;;  %v287_v11 = vld [vmem:[%s2063_s7 + $0x44] sm:$0x1]  ;;  %v480_v13 = vshll.u32 %v2070_v2, 16  ;;  %v420_v14 = vunpack.c.l.b16 %v272_v6  ;;  %v454_v15 = vshrl.u32 %v2074_v5, 16  ;;  %v2086_v16 = vld [vmem:[%s2063_s7 + $0x3c] sm:$0xff] }
  0x1e   : > { %v2081_v12 = vpack.c.b16 %v424_v3, %v424_v3  ;;  %v506_v17 = vrot.slane %v504_v8, 1  ;;  %v2088_v18 = vpack.c.b16 %v422_v9, %v422_v9  ;;  %v456_v19 = vshll.u32 %v2074_v5, 16  ;;  %v281_v25 = vld [vmem:[%s2063_s7 + $0x2c] sm:$0x1]  ;;  %v2100_v30 = vld [vmem:[%s2063_s7 + $0x24] sm:$0xff]  ;;  %v2133_v59 = vld [vmem:[%s2063_s7 + $0x54] sm:$0xff] }
  0x1f   : > { %v425_v20 = vunpack.c.l.b16 %v287_v11  ;;  %v482_v22 = vrot.slane %v480_v13, 1  ;;  %v2092_v23 = vpack.c.b16 %v420_v14, %v420_v14  ;;  %v514_v24 = vshrl.u32 %v2086_v16, 16  ;;  %v2106_v39 = vld [vmem:[%s2063_s7 + $0xc] sm:$0xff]  ;;  %v275_v40 = vld [vmem:[%s2063_s7 + $0x14] sm:$0x1]  ;;  %v2114_v45 = vld [vmem:[%s2063_s7 + $0x60] sm:$0xff] }
  0x20   : > { %v509_v21 = vshll.u32 %v2081_v12, 16  ;;  %v507_v26 = vor.u32 %v506_v17, %v502_v7  ;;  %v485_v27 = vshll.u32 %v2088_v18, 16  ;;  %v458_v28 = vrot.slane %v456_v19, 1  ;;  %v296_v46 = vld [vmem:[%s2063_s7 + $0x68] sm:$0x1] }
  0x21   : > { %v2097_v29 = vpack.c.b16 %v425_v20, %v425_v20  ;;  %v483_v32 = vor.u32 %v482_v22, %v478_v10  ;;  %v461_v33 = vshll.u32 %v2092_v23, 16  ;;  %v516_v34 = vshll.u32 %v2086_v16, 16  ;;  %v293_v60 = vld [vmem:[%s2063_s7 + $0x5c] sm:$0x1]  ;;  %v2146_v8 = vld [vmem:[%s2063_s7 + $0x48] sm:$0xff] }
  0x22   : > { %v511_v31 = vrot.slane %v509_v21, 1  ;;  %v487_v35 = vrot.slane %v485_v27, 1  ;;  %v459_v36 = vor.u32 %v458_v28, %v454_v15  ;;  %v423_v38 = vunpack.c.l.b16 %v281_v25  ;;  %v290_v9 = vld [vmem:[%s2063_s7 + $0x50] sm:$0x1]  ;;  %v305_v21 = vld [vmem:[%s2063_s7 + $0x8c] sm:$0x1] }
  0x23   : > { %v521_v37 = vshll.u32 %v2097_v29, 16  ;;  %v463_v42 = vrot.slane %v461_v33, 1  ;;  %v518_v43 = vrot.slane %v516_v34, 1  ;;  %v490_v44 = vshrl.u32 %v2100_v30, 16  ;;  %v2160_v27 = vld [vmem:[%s2063_s7 + $0x84] sm:$0xff]  ;;  %v2167_v34 = vld [vmem:[%s2063_s7 + $0x78] sm:$0xff] }
  0x24   : > { %v2110_v41 = vsel %vm452_vm0, %v507_v26, %v511_v31  ;;  %v2120_v47 = vsel %vm452_vm0, %v483_v32, %v487_v35  ;;  %v2122_v49 = vpack.c.b16 %v423_v38, %v423_v38  ;;  %v492_v50 = vshll.u32 %v2100_v30, 16 }
  0x25   : > { %653 = vrot.lane.b32.xlu2 %v2110_v41, %s1969_s8  ;;  %v523_v48 = vrot.slane %v521_v37, 1  ;;  %649 = vrot.lane.b32.xlu1 %v2120_v47, %s1969_s8  ;;  %v464_v51 = vsel %vm452_vm0, %v459_v36, %v463_v42  ;;  %v519_v52 = vor.u32 %v518_v43, %v514_v24  ;;  %v421_v53 = vunpack.c.l.b16 %v275_v40  ;;  %v302_v40 = vld [vmem:[%s2063_s7 + $0x80] sm:$0x1] }
  0x26   : > { %v466_v54 = vshrl.u32 %v2106_v39, 16  ;;  %645 = vrot.lane.b32.xlu0 %v464_v51, %s1969_s8  ;;  %v494_v55 = vrot.slane %v492_v50, 1  ;;  %v497_v56 = vshll.u32 %v2122_v49, 16  ;;  %v468_v57 = vshll.u32 %v2106_v39, 16 }
  0x27   : > { %v428_v58 = vunpack.c.l.b16 %v296_v46  ;;  %v2137_v61 = vsel %vm452_vm0, %v519_v52, %v523_v48  ;;  %v2139_v62 = vpack.c.b16 %v421_v53, %v421_v53  ;;  %v550_v63 = vshrl.u32 %v2114_v45, 16  ;;  %v2186_v52 = vld [vmem:[%s2063_s7 + $0x6c] sm:$0xff]  ;;  %v299_v53 = vld [vmem:[%s2063_s7 + $0x74] sm:$0x1] }
  0x28   : > { %3009 = vst [vmem:[#allocation5_spill] sm:$0xff] %v2137_v61  ;;  %v552_v1 = vshll.u32 %v2114_v45, 16  ;;  %v495_v3 = vor.u32 %v494_v55, %v490_v44  ;;  %v499_v4 = vrot.slane %v497_v56, 1  ;;  %v470_v6 = vrot.slane %v468_v57, 1 }
  0x29   : > { %v2143_v7 = vpack.c.b16 %v428_v58, %v428_v58  ;;  %v473_v10 = vshll.u32 %v2139_v62, 16  ;;  %v427_v13 = vunpack.c.l.b16 %v293_v60  ;;  %v538_v14 = vshrl.u32 %v2133_v59, 16  ;;  %v2194_v58 = vld [vmem:[%s2063_s7 + $0xa8] sm:$0xff] }
  0x2a   : > { %v554_v11 = vrot.slane %v552_v1, 1  ;;  %v2152_v15 = vsel %vm452_vm0, %v495_v3, %v499_v4  ;;  %v471_v17 = vor.u32 %v470_v6, %v466_v54  ;;  %v540_v20 = vshll.u32 %v2133_v59, 16  ;;  %v314_v4 = vld [vmem:[%s2063_s7 + $0xb0] sm:$0x1] }
  0x2b   : > { %v557_v19 = vshll.u32 %v2143_v7, 16  ;;  %v475_v22 = vrot.slane %v473_v10, 1  ;;  %v2157_v25 = vpack.c.b16 %v427_v13, %v427_v13  ;;  %v426_v26 = vunpack.c.l.b16 %v290_v9 }
  0x2c   : > { %v555_v24 = vor.u32 %v554_v11, %v550_v63  ;;  %v542_v31 = vrot.slane %v540_v20, 1  ;;  %v526_v32 = vshrl.u32 %v2146_v8, 16  ;;  %v528_v33 = vshll.u32 %v2146_v8, 16  ;;  %v2210_v20 = vld [vmem:[%s2063_s7 + $0x9c] sm:$0xff] }
  0x2d   : > { %655 = vrot.lane.b32.xlu2 %v2137_v61, %s1969_s8  ;;  %v559_v28 = vrot.slane %v557_v19, 1  ;;  %651 = vrot.lane.b32.xlu1 %v2152_v15, %s1969_s8  ;;  %v2172_v35 = vsel %vm452_vm0, %v471_v17, %v475_v22  ;;  %v545_v36 = vshll.u32 %v2157_v25, 16  ;;  %v2175_v37 = vpack.c.b16 %v426_v26, %v426_v26 }
  0x2e   : > { %v431_v38 = vunpack.c.l.b16 %v305_v21  ;;  %647 = vrot.lane.b32.xlu0 %v2172_v35, %s1969_s8  ;;  %v543_v42 = vor.u32 %v542_v31, %v538_v14  ;;  %v530_v43 = vrot.slane %v528_v33, 1  ;;  %v586_v44 = vshrl.u32 %v2160_v27, 16  ;;  %v311_v21 = vld [vmem:[%s2063_s7 + $0xa4] sm:$0x1] }
  0x2f   : > { %v547_v46 = vrot.slane %v545_v36, 1  ;;  %v533_v48 = vshll.u32 %v2175_v37, 16  ;;  %v588_v51 = vshll.u32 %v2160_v27, 16  ;;  %v2190_v54 = vsel %vm452_vm0, %v555_v24, %v559_v28 }
  0x30   : > { %v2182_v50 = vpack.c.b16 %v431_v38, %v431_v38  ;;  %v531_v55 = vor.u32 %v530_v43, %v526_v32  ;;  %v430_v56 = vunpack.c.l.b16 %v302_v40  ;;  %v576_v57 = vshll.u32 %v2167_v34, 16  ;;  %v2227_v43 = vld [vmem:[%s2063_s7 + $0x90] sm:$0xff] }
  0x31   : > { %v535_v60 = vrot.slane %v533_v48, 1  ;;  %v590_v63 = vrot.slane %v588_v51, 1  ;;  %v574_v3 = vshrl.u32 %v2167_v34, 16  ;;  %v2200_v6 = vsel %vm452_vm0, %v543_v42, %v547_v46 }
  0x32   : > { %v593_v1 = vshll.u32 %v2182_v50, 16  ;;  %v2202_v9 = vpack.c.b16 %v430_v56, %v430_v56  ;;  %v578_v10 = vrot.slane %v576_v57, 1  ;;  %v429_v11 = vunpack.c.l.b16 %v299_v53 }
  0x33   : > { %v2205_v13 = vsel %vm452_vm0, %v531_v55, %v535_v60  ;;  %v591_v14 = vor.u32 %v590_v63, %v586_v44  ;;  %v562_v17 = vshrl.u32 %v2186_v52, 16  ;;  %v564_v19 = vshll.u32 %v2186_v52, 16  ;;  %v308_v44 = vld [vmem:[%s2063_s7 + $0x98] sm:$0x1] }
  0x34   : > { %v595_v22 = vrot.slane %v593_v1, 1  ;;  %v581_v24 = vshll.u32 %v2202_v9, 16  ;;  %v2216_v26 = vpack.c.b16 %v429_v11, %v429_v11  ;;  %v434_v28 = vunpack.c.l.b16 %v314_v4 }
  0x35   : > { %661 = vrot.lane.b32.xlu2 %v2190_v54, %s1969_s8  ;;  %659 = vrot.lane.b32.xlu1 %v2200_v6, %s1969_s8  ;;  %v579_v31 = vor.u32 %v578_v10, %v574_v3  ;;  %v566_v32 = vrot.slane %v564_v19, 1  ;;  %v624_v33 = vshll.u32 %v2194_v58, 16  ;;  %v433_v42 = vunpack.c.l.b16 %v311_v21 }
  0x36   : > { %657 = vrot.lane.b32.xlu0 %v2205_v13, %s1969_s8  ;;  %v583_v36 = vrot.slane %v581_v24, 1  ;;  %v569_v38 = vshll.u32 %v2216_v26, 16  ;;  %v2224_v40 = vpack.c.b16 %v434_v28, %v434_v28  ;;  %v612_v48 = vshll.u32 %v2210_v20, 16 }
  0x37   : > { %v567_v46 = vor.u32 %v566_v32, %v562_v17  ;;  %v2232_v51 = vsel %vm452_vm0, %v591_v14, %v595_v22  ;;  %v622_v55 = vshrl.u32 %v2194_v58, 16  ;;  %v2235_v56 = vpack.c.b16 %v433_v42, %v433_v42  ;;  %v317_v14 = vld [vmem:[%s2063_s7 + $0xbc] sm:$0x1]  ;;  %v2252_v22 = vld [vmem:[%s2063_s7 + $0xb4] sm:$0xff] }
  0x38   : > { %v571_v53 = vrot.slane %v569_v38, 1  ;;  %v626_v57 = vrot.slane %v624_v33, 1  ;;  %v629_v60 = vshll.u32 %v2224_v40, 16  ;;  %v610_v63 = vshrl.u32 %v2210_v20, 16 }
  0x39   : > { %v432_v1 = vunpack.c.l.b16 %v308_v44  ;;  %v2240_v3 = vsel %vm452_vm0, %v579_v31, %v583_v36  ;;  %v614_v4 = vrot.slane %v612_v48, 1  ;;  %v617_v10 = vshll.u32 %v2235_v56, 16 }
  0x3a   : > { %v600_v11 = vshll.u32 %v2227_v43, 16  ;;  %v2246_v17 = vsel %vm452_vm0, %v567_v46, %v571_v53  ;;  %v598_v21 = vshrl.u32 %v2227_v43, 16  ;;  %v627_v28 = vor.u32 %v626_v57, %v622_v55 }
  0x3b   : > { %3010 = vst [vmem:[#allocation6_spill] sm:$0xff] %v2246_v17  ;;  %v2248_v19 = vpack.c.b16 %v432_v1, %v432_v1  ;;  %v631_v31 = vrot.slane %v629_v60, 1  ;;  %v435_v33 = vunpack.c.l.b16 %v317_v14  ;;  %v615_v36 = vor.u32 %v614_v4, %v610_v63 }
  0x3c   : > { %v602_v24 = vrot.slane %v600_v11, 1  ;;  %v619_v38 = vrot.slane %v617_v10, 1  ;;  %v636_v48 = vshll.u32 %v2252_v22, 16  ;;  %v634_v60 = vshrl.u32 %v2252_v22, 16 }
  0x3d   : > { %667 = vrot.lane.b32.xlu2 %v2232_v51, %s1969_s8  ;;  %665 = vrot.lane.b32.xlu1 %v2240_v3, %s1969_s8  ;;  %v605_v32 = vshll.u32 %v2248_v19, 16  ;;  %v2261_v46 = vpack.c.b16 %v435_v33, %v435_v33  ;;  %v2265_v53 = vsel %vm452_vm0, %v627_v28, %v631_v31  ;;  %v681_v4 = vrot.slane %v2106_v39, 1 }
  0x3e   : > { %663 = vrot.lane.b32.xlu0 %v2246_v17, %s1969_s8  ;;  %v603_v42 = vor.u32 %v602_v24, %v598_v21  ;;  %v2268_v55 = vsel %vm452_vm0, %v615_v36, %v619_v38  ;;  %v638_v1 = vrot.slane %v636_v48, 1  ;;  %v682_v10 = vrot.slane %v2139_v62, 1 }
  0x3f   : > { %v607_v44 = vrot.slane %v605_v32, 1  ;;  %v641_v63 = vshll.u32 %v2261_v46, 16  ;;  %v678_v11 = vrot.slane %v2074_v5, 1  ;;  %v679_v14 = vrot.slane %v2092_v23, 1 }
  0x40   : > { %v639_v21 = vor.u32 %v638_v1, %v634_v60  ;;  %v2286_v28 = vsel %vm677_vm1, %v681_v4, %v682_v10  ;;  %v690_v62 = vrot.slane %v2066_v0, 1  ;;  %v691_v23 = vrot.slane %v2081_v12, 1 }
  0x41   : > { %v2271_v57 = vsel %vm452_vm0, %v603_v42, %v607_v44  ;;  %v643_v24 = vrot.slane %v641_v63, 1  ;;  %v680_v31 = vsel %vm677_vm1, %v678_v11, %v679_v14  ;;  %v687_v33 = vrot.slane %v2100_v30, 1 }
  0x42   : > { %v688_v36 = vrot.slane %v2122_v49, 1  ;;  %v684_v38 = vrot.slane %v2070_v2, 1  ;;  %v685_v42 = vrot.slane %v2088_v18, 1  ;;  %v2304_v44 = vsel %vm677_vm1, %v690_v62, %v691_v23 }
  0x43   : > { %v2290_v32 = vsel %vm452_vm0, %v639_v21, %v643_v24  ;;  %v699_v12 = vrot.slane %v2133_v59, 1  ;;  %v700_v49 = vrot.slane %v2157_v25, 1  ;;  %v696_v18 = vrot.slane %v2146_v8, 1 }
  0x44   : > { %v2307_v48 = vsel %vm677_vm1, %v687_v33, %v688_v36  ;;  %v2310_v60 = vsel %vm677_vm1, %v684_v38, %v685_v42  ;;  %v697_v1 = vrot.slane %v2175_v37, 1  ;;  %v693_v63 = vrot.slane %v2086_v16, 1 }
  0x45   : > { %673 = vrot.lane.b32.xlu2 %v2265_v53, %s1969_s8  ;;  %671 = vrot.lane.b32.xlu1 %v2268_v55, %s1969_s8  ;;  %v694_v4 = vrot.slane %v2097_v29, 1  ;;  %v2325_v10 = vsel %vm677_vm1, %v699_v12, %v700_v49  ;;  %v708_v25 = vrot.slane %v2167_v34, 1  ;;  %v709_v37 = vrot.slane %v2202_v9, 1 }
  0x46   : > { %669 = vrot.lane.b32.xlu0 %v2271_v57, %s1969_s8  ;;  %v2328_v11 = vsel %vm677_vm1, %v696_v18, %v697_v1  ;;  %v705_v29 = vrot.slane %v2186_v52, 1  ;;  %v706_v21 = vrot.slane %v2216_v26, 1  ;;  %v702_v24 = vrot.slane %v2114_v45, 1 }
  0x47   : > { %v2331_v14 = vsel %vm677_vm1, %v693_v63, %v694_v4  ;;  %v2346_v62 = vsel %vm677_vm1, %v708_v25, %v709_v37  ;;  %v717_v9 = vrot.slane %v2210_v20, 1  ;;  %v718_v26 = vrot.slane %v2235_v56, 1 }
  0x48   : > { %3011 = vst [vmem:[#allocation7_spill] sm:$0xff] %v2331_v14  ;;  %v2349_v23 = vsel %vm677_vm1, %v705_v29, %v706_v21  ;;  %v715_v36 = vrot.slane %v2248_v19, 1  ;;  %v711_v38 = vrot.slane %v2160_v27, 1  ;;  %v712_v42 = vrot.slane %v2182_v50, 1 }
  0x49   : > { %3012 = vst [vmem:[#allocation8_spill] sm:$0xff] %v2349_v23  ;;  %v2367_v12 = vsel %vm677_vm1, %v717_v9, %v718_v26  ;;  %v723_v50 = vrot.slane %v2252_v22, 1  ;;  %v724_v56 = vrot.slane %v2261_v46, 1  ;;  %v720_v19 = vrot.slane %v2194_v58, 1 }
  0x4a   : > { %v2373_v18 = vsel %vm677_vm1, %v711_v38, %v712_v42  ;;  %v721_v1 = vrot.slane %v2224_v40, 1 }
  0x4b   : > { %v2386_v63 = vsel %vm677_vm1, %v723_v50, %v724_v56 }
  0x4c   : > { %v2389_v4 = vsel %vm677_vm1, %v720_v19, %v721_v1 }
  0x4d   : > { %728 = vrot.lane.b32.xlu2 %v2286_v28, %s1970_s9  ;;  %726 = vrot.lane.b32.xlu1 %v680_v31, %s1970_s9  ;;  %v703_v31 = vrot.slane %v2143_v7, 1  ;;  %v714_v7 = vrot.slane %v2227_v43, 1 }
  0x4e   : > { %675 = vrot.lane.b32.xlu0 %v2290_v32, %s1969_s8  ;;  %s246_s8 = sand.u32 1, %s1951_s16  }
  0x4f   : > { %v2352_v33 = vsel %vm677_vm1, %v702_v24, %v703_v31  ;;  %v2370_v49 = vsel %vm677_vm1, %v714_v7, %v715_v36  ;;  %v2415_v24 = vld [vmem:[%s2063_s7 + $0xc0] sm:$0xff]  ;;  %s1543_s29 = scalar_lea.sflag [#allocation3], %s246_s8 }
  0x55   : > { %734 = vrot.lane.b32.xlu2 %v2304_v44, %s1970_s9  ;;  %732 = vrot.lane.b32.xlu1 %v2307_v48, %s1970_s9 }
  0x56   : > { %730 = vrot.lane.b32.xlu0 %v2310_v60, %s1970_s9 }
  0x5d   : > { %740 = vrot.lane.b32.xlu2 %v2325_v10, %s1970_s9  ;;  %738 = vrot.lane.b32.xlu1 %v2328_v11, %s1970_s9 }
  0x5e   : > { %736 = vrot.lane.b32.xlu0 %v2331_v14, %s1970_s9 }
  0x65   : > { %746 = vrot.lane.b32.xlu2 %v2346_v62, %s1970_s9  ;;  %744 = vrot.lane.b32.xlu1 %v2349_v23, %s1970_s9 }
  0x66   : > { %742 = vrot.lane.b32.xlu0 %v2352_v33, %s1970_s9 }
  0x6d   : > { %752 = vrot.lane.b32.xlu2 %v2367_v12, %s1970_s9  ;;  %750 = vrot.lane.b32.xlu1 %v2370_v49, %s1970_s9 }
  0x6e   : > { %748 = vrot.lane.b32.xlu0 %v2373_v18, %s1970_s9 }
  0x75   : > { %763 = vrot.lane.b32.xlu2 %v2106_v39, %s1971_s10  ;;  %756 = vrot.lane.b32.xlu1 %v2386_v63, %s1970_s9 }
  0x76   : > { %754 = vrot.lane.b32.xlu0 %v2389_v4, %s1970_s9 }
  0x7d   : > { %769 = vrot.lane.b32.xlu2 %v2066_v0, %s1971_s10  ;;  %767 = vrot.lane.b32.xlu1 %v2100_v30, %s1971_s10 }
  0x7e   : > { %765 = vrot.lane.b32.xlu0 %v2070_v2, %s1971_s10 }
  0x7f   : > { %v654_v40 = vpop.permute.xlu2 %653 }
  0x85   : > { %775 = vrot.lane.b32.xlu2 %v2133_v59, %s1971_s10  ;;  %773 = vrot.lane.b32.xlu1 %v2146_v8, %s1971_s10 }
  0x86   : > { %771 = vrot.lane.b32.xlu0 %v2086_v16, %s1971_s10 }
  0x87   : > { %v2402_v46 = vpop.permute.xlu2 %655 }
  0x8d   : > { %781 = vrot.lane.b32.xlu2 %v2167_v34, %s1971_s10  ;;  %779 = vrot.lane.b32.xlu1 %v2186_v52, %s1971_s10 }
  0x8e   : > { %777 = vrot.lane.b32.xlu0 %v2114_v45, %s1971_s10 }
  0x8f   : > { %v2407_v25 = vpop.permute.xlu2 %661 }
  0x95   : > { %787 = vrot.lane.b32.xlu2 %v2210_v20, %s1971_s10  ;;  %785 = vrot.lane.b32.xlu1 %v2227_v43, %s1971_s10 }
  0x96   : > { %783 = vrot.lane.b32.xlu0 %v2160_v27, %s1971_s10 }
  0x97   : > { %v2412_v37 = vpop.permute.xlu2 %667  ;;  %v650_v29 = vpop.permute.xlu1 %649 }
  0x98   : > { %v646_v21 = vpop.permute.xlu0 %645 }
  0x9d   : > { %793 = vrot.lane.b32.xlu2 %v2415_v24, %s1971_s10  ;;  %791 = vrot.lane.b32.xlu1 %v2252_v22, %s1971_s10 }
  0x9e   : > { %789 = vrot.lane.b32.xlu0 %v2194_v58, %s1971_s10  ;;  %s1909_s10 = scalar_lea.hbm %s3002_s4, 512 }
  0x9f   : > { %v2420_v31 = vpop.permute.xlu2 %673  ;;  %v652_v9 = vpop.permute.xlu1 %651 }
  0xa0   : > { %v648_v26 = vpop.permute.xlu0 %647 }
  0xa1   : > { %v1000_v7 = vsel %vm996_vm3, %v2106_v39, %v648_v26  ;;  %v1006_v39 = vsel %vm996_vm3, %v2066_v0, %v654_v40 }
  0xa5   : > { %834 = vrot.lane.b32.xlu2 %v2268_v55, %s1972_s11  ;;  %826 = vrot.lane.b32.xlu1 %v2246_v17, %s1972_s11 }
  0xa6   : > { %810 = vrot.lane.b32.xlu0 %v2172_v35, %s1972_s11 }
  0xa7   : > { %v729_v36 = vpop.permute.xlu2 %728  ;;  %v660_v38 = vpop.permute.xlu1 %659 }
  0xa8   : > { %v2431_v42 = vsel %vm1029_vm2, %v1000_v7, %v729_v36  ;;  %v658_v50 = vpop.permute.xlu0 %657  ;;  %v1012_v26 = vsel %vm996_vm3, %v2133_v59, %v660_v38 }
  0xad   : > { %898 = vrot.lane.b32.xlu2 %v2167_v34, %s1973_s12  ;;  %869 = vrot.lane.b32.xlu1 %v2367_v12, %s1974_s13 }
  0xae   : > { %861 = vrot.lane.b32.xlu0 %v2349_v23, %s1974_s13  ;;  %v998_v23 = vsel %vm996_vm3, %v2074_v5, %v646_v21  ;;  %v1004_v21 = vsel %vm996_vm3, %v2100_v30, %v652_v9  ;;  %v1010_v9 = vsel %vm996_vm3, %v2146_v8, %v658_v50  ;;  %v1014_v50 = vsel %vm996_vm3, %v2114_v45, %v2407_v25 }
  0xaf   : > { %v735_v35 = vpop.permute.xlu2 %734  ;;  %v666_v56 = vpop.permute.xlu1 %665 }
  0xb0   : > { %v2442_v19 = vsel %vm1029_vm2, %v1006_v39, %v735_v35  ;;  %v664_v1 = vpop.permute.xlu0 %663  ;;  %v1018_v35 = vsel %vm996_vm3, %v2167_v34, %v666_v56 }
  0xb5   : > { %953 = vrot.lane.b32.xlu2 %v2265_v53, %s1975_s14  ;;  %945 = vrot.lane.b32.xlu1 %v2240_v3, %s1975_s14 }
  0xb6   : > { %906 = vrot.lane.b32.xlu0 %v2194_v58, %s1973_s12 }
  0xb7   : > { %v741_v40 = vpop.permute.xlu2 %740  ;;  %v672_v7 = vpop.permute.xlu1 %671 }
  0xb8   : > { %v2453_v36 = vsel %vm1029_vm2, %v1012_v26, %v741_v40  ;;  %v670_v39 = vpop.permute.xlu0 %669  ;;  %v1024_v34 = vsel %vm996_vm3, %v2210_v20, %v672_v7  ;;  %v1008_v7 = vsel %vm996_vm3, %v2086_v16, %v2402_v46 }
  0xbd   : > { %818 = vrot.lane.b32.xlu2 %v2137_v61, %s1972_s11  ;;  %988 = vrot.lane.b32.xlu1 %v2389_v4, %s1976_s21 }
  0xbe   : > { %980 = vrot.lane.b32.xlu0 %v2346_v62, %s1976_s21 }
  0xbf   : > { %v747_v38 = vpop.permute.xlu2 %746  ;;  %v727_v40 = vpop.permute.xlu1 %726 }
  0xc0   : > { %v2466_v26 = vsel %vm1029_vm2, %v1018_v35, %v747_v38  ;;  %v1031_v61 = vsel %vm1029_vm2, %v998_v23, %v727_v40  ;;  %v676_v17 = vpop.permute.xlu0 %675  ;;  %v1002_v35 = vsel %vm996_vm3, %v2070_v2, %v650_v29 }
  0xc5   : > { %882 = vrot.lane.b32.xlu2 %v2070_v2, %s1973_s12  ;;  %853 = vrot.lane.b32.xlu1 %v2331_v14, %s1974_s13 }
  0xc6   : > { %845 = vrot.lane.b32.xlu0 %v2286_v28, %s1974_s13 }
  0xc7   : > { %v753_v5 = vpop.permute.xlu2 %752  ;;  %v733_v23 = vpop.permute.xlu1 %732 }
  0xc8   : > { %v2480_v56 = vsel %vm1029_vm2, %v1024_v34, %v753_v5  ;;  %v1037_v38 = vsel %vm1029_vm2, %v1004_v21, %v733_v23  ;;  %v731_v40 = vpop.permute.xlu0 %730 }
  0xc9   : > { %v1035_v14 = vsel %vm1029_vm2, %v1002_v35, %v731_v40 }
  0xcd   : > { %937 = vrot.lane.b32.xlu2 %v2205_v13, %s1975_s14  ;;  %929 = vrot.lane.b32.xlu1 %v2120_v47, %s1975_s14 }
  0xce   : > { %890 = vrot.lane.b32.xlu0 %v2146_v8, %s1973_s12  ;;  %v1016_v8 = vsel %vm996_vm3, %v2186_v52, %v664_v1 }
  0xcf   : > { %v764_v28 = vpop.permute.xlu2 %763  ;;  %v739_v29 = vpop.permute.xlu1 %738 }
  0xd0   : > { %v2495_v2 = vsel %vm1062_vm4, %v1031_v61, %v764_v28  ;;  %v1043_v34 = vsel %vm1029_vm2, %v1010_v9, %v739_v29  ;;  %v737_v5 = vpop.permute.xlu0 %736  ;;  %v1020_v28 = vsel %vm996_vm3, %v2160_v27, %v2412_v37 }
  0xd1   : > { %v1041_v21 = vsel %vm1029_vm2, %v1008_v7, %v737_v5  ;;  %v1026_v7 = vsel %vm996_vm3, %v2194_v58, %v2420_v31 }
  0xd5   : > { %828 = vrot.lane.b32.xlu2 %v2240_v3, %s1972_s11  ;;  %972 = vrot.lane.b32.xlu1 %v2328_v11, %s1976_s21 }
  0xd6   : > { %964 = vrot.lane.b32.xlu0 %v2310_v60, %s1976_s21 }
  0xd7   : > { %v770_v61 = vpop.permute.xlu2 %769  ;;  %v745_v46 = vpop.permute.xlu1 %744 }
  0xd8   : > { %v2511_v16 = vsel %vm1062_vm4, %v1037_v38, %v770_v61  ;;  %v1049_v3 = vsel %vm1029_vm2, %v1016_v8, %v745_v46  ;;  %v743_v23 = vpop.permute.xlu0 %742  ;;  %v1022_v38 = vsel %vm996_vm3, %v2227_v43, %v670_v39  ;;  %v1028_v39 = vsel %vm996_vm3, %v2252_v22, %v676_v17 }
  0xd9   : > { %v2518_v35 = vsel %vm1029_vm2, %v1014_v50, %v743_v23 }
  0xdd   : > { %871 = vrot.lane.b32.xlu2 %v2389_v4, %s1974_s13  ;;  %863 = vrot.lane.b32.xlu1 %v2346_v62, %s1974_s13 }
  0xde   : > { %836 = vrot.lane.b32.xlu0 %v2265_v53, %s1972_s11 }
  0xdf   : > { %v776_v1 = vpop.permute.xlu2 %775  ;;  %v751_v40 = vpop.permute.xlu1 %750 }
  0xe0   : > { %v2529_v25 = vsel %vm1062_vm4, %v1043_v34, %v776_v1  ;;  %v2535_v4 = vsel %vm1029_vm2, %v1022_v38, %v751_v40  ;;  %v749_v9 = vpop.permute.xlu0 %748 }
  0xe1   : > { %v1053_v62 = vsel %vm1029_vm2, %v1020_v28, %v749_v9 }
  0xe5   : > { %947 = vrot.lane.b32.xlu2 %v2232_v51, %s1975_s14  ;;  %908 = vrot.lane.b32.xlu1 %v2252_v22, %s1973_s12 }
  0xe6   : > { %900 = vrot.lane.b32.xlu0 %v2160_v27, %s1973_s12 }
  0xe7   : > { %v782_v53 = vpop.permute.xlu2 %781  ;;  %v757_v29 = vpop.permute.xlu1 %756 }
  0xe8   : > { %v2547_v37 = vsel %vm1062_vm4, %v1049_v3, %v782_v53  ;;  %v1061_v34 = vsel %vm1029_vm2, %v1028_v39, %v757_v29  ;;  %v755_v5 = vpop.permute.xlu0 %754  ;;  %v1810_v53 = vld [vmem:[%s2999_s1 + $0x8] sm:$0xff]  ;;  %v801_v39 = vshll.u32 %v2415_v24, 16 }
  0xe9   : > { %v1059_v61 = vsel %vm1029_vm2, %v1026_v7, %v755_v5  ;;  %v799_v5 = vshrl.u32 %v2415_v24, 16 }
  0xed   : > { %990 = vrot.lane.b32.xlu2 %v2386_v63, %s1976_s21  ;;  %982 = vrot.lane.b32.xlu1 %v2373_v18, %s1976_s21 }
  0xee   : > { %955 = vrot.lane.b32.xlu0 %v2290_v32, %s1975_s14 }
  0xef   : > { %v2560_v27 = vpop.permute.xlu2 %787  ;;  %v768_v17 = vpop.permute.xlu1 %767 }
  0xf0   : > { %v2563_v22 = vsel %vm1062_vm4, %v1035_v14, %v768_v17  ;;  %v766_v58 = vpop.permute.xlu0 %765  ;;  %v803_v17 = vrot.slane %v801_v39, 1 }
  0xf1   : > { %v2567_v31 = vsel %vm1062_vm4, %v2431_v42, %v766_v58 }
  0xf5   : > { %847 = vrot.lane.b32.xlu2 %v2310_v60, %s1974_s13  ;;  %820 = vrot.lane.b32.xlu1 %v2205_v13, %s1972_s11 }
  0xf6   : > { %812 = vrot.lane.b32.xlu0 %v2120_v47, %s1972_s11 }
  0xf7   : > { %v794_v8 = vpop.permute.xlu2 %793  ;;  %v774_v14 = vpop.permute.xlu1 %773 }
  0xf8   : > { %v2576_v46 = vsel %vm1062_vm4, %v1061_v34, %v794_v8  ;;  %v2579_v50 = vsel %vm1062_vm4, %v1041_v21, %v774_v14  ;;  %v772_v3 = vpop.permute.xlu0 %771  ;;  %v804_v8 = vor.u32 %v803_v17, %v799_v5  ;;  %v323_v5 = vld [vmem:[%s2063_s7 + $0xd4] sm:$0x1] }
  0xf9   : > { %v2583_v42 = vsel %vm1062_vm4, %v2442_v19, %v772_v3  ;;  %v1264_v19 = vld [vmem:[%s2999_s1 + $0x10] sm:$0x3] }
  0xfd   : > { %892 = vrot.lane.b32.xlu2 %v2133_v59, %s1973_s12  ;;  %884 = vrot.lane.b32.xlu1 %v2100_v30, %s1973_s12  ;;  %v1274_v59 = vunpack.c.l.b16 %v1264_v19 }
  0xfe   : > { %855 = vrot.lane.b32.xlu0 %v2328_v11, %s1974_s13 }
  0xff   : > { %v2591_v47 = vpop.permute.xlu2 %834  ;;  %v2593_v13 = vpop.permute.xlu1 %779  ;;  %v1277_v30 = vpack.c.b16 %v1274_v59, %v1274_v59 }
 0x100   : > { %v778_v60 = vpop.permute.xlu0 %777 }
 0x101   : > { %v2597_v21 = vsel %vm1062_vm4, %v2453_v36, %v778_v60  ;;  %v320_v36 = vld [vmem:[%s2063_s7 + $0xc8] sm:$0x1]  ;;  %v1315_v23 = vsel %vm1313_vm5, %v1277_v30, 0 }
 0x102   : > { %1813 = vmatpush.bf16.msra.mxu2 %v1315_v23  ;;  %1814 = vmatpush.bf16.msra.mxu3 %v1315_v23  ;;  %v796_v9 = vunpack.c.l.b16 %v320_v36 }
 0x103   : > { %1322 = vmatpush.bf16.msra.mxu0 %v1315_v23  ;;  %1812 = vmatpush.bf16.msra.mxu1 %v1315_v23 }
 0x105   : > { %966 = vrot.lane.b32.xlu2 %v2307_v48, %s1976_s21  ;;  %939 = vrot.lane.b32.xlu1 %v2200_v6, %s1975_s14 }
 0x106   : > { %931 = vrot.lane.b32.xlu0 %v2152_v15, %s1975_s14  ;;  %1816 = vmatpush.bf16.msra.mxu2 %v1810_v53 }
 0x107   : > { %v2608_v11 = vpop.permute.xlu2 %898  ;;  %v786_v1 = vpop.permute.xlu1 %785  ;;  %1817 = vmatpush.bf16.msra.mxu3 %v1810_v53  ;;  %1323 = vmatpush.bf16.msra.mxu0 %v1810_v53 }
 0x108   : > { %v2612_v38 = vsel %vm1062_vm4, %v1053_v62, %v786_v1  ;;  %v784_v40 = vpop.permute.xlu0 %783  ;;  %v797_v62 = vpack.c.b16 %v796_v9, %v796_v9  ;;  %1815 = vmatpush.bf16.msra.mxu1 %v1810_v53  ;;  %v1088_v1 = vsel %vm1062_vm4, %v2535_v4, %v2560_v27 }
 0x109   : > { %v2616_v28 = vsel %vm1062_vm4, %v2466_v26, %v784_v40  ;;  %v1809_v26 = vld [vmem:[%s2999_s1] sm:$0xff]  ;;  %v1121_v40 = vsel %vm1095_vm6, %v1088_v1, %v2591_v47 }
 0x10a   : > { %1819 = vmatpush.bf16.msra.mxu2 %v1809_v26  ;;  %v806_v58 = vshll.u32 %v797_v62, 16 }
 0x10b   : > { %1820 = vmatpush.bf16.msra.mxu3 %v1809_v26  ;;  %1324 = vmatpush.bf16.msra.mxu0 %v1809_v26 }
 0x10c   : > { %1818 = vmatpush.bf16.msra.mxu1 %v1809_v26 }
 0x10d   : > { %838 = vrot.lane.b32.xlu2 %v2290_v32, %s1972_s11  ;;  %830 = vrot.lane.b32.xlu1 %v2232_v51, %s1972_s11 }
 0x10e   : > { %974 = vrot.lane.b32.xlu0 %v2325_v10, %s1976_s21 }
 0x10f   : > { %v954_v29 = vpop.permute.xlu2 %953  ;;  %v792_v7 = vpop.permute.xlu1 %791 }
 0x110   : > { %v2632_v32 = vsel %vm1062_vm4, %v1059_v61, %v792_v7  ;;  %v790_v34 = vpop.permute.xlu0 %789  ;;  %v808_v61 = vrot.slane %v806_v58, 1  ;;  %v915_v58 = vunpack.c.l.b16 %v323_v5  ;;  %v3014_v5 = vld [vmem:[#allocation5_spill] sm:$0xff] }
 0x111   : > { %v2636_v51 = vsel %vm1062_vm4, %v2480_v56, %v790_v34 }
 0x112   : > { %v2646_v60 = vsel %vm452_vm0, %v804_v8, %v808_v61 }
 0x115   : > { %902 = vrot.lane.b32.xlu2 %v2227_v43, %s1973_s12  ;;  %873 = vrot.lane.b32.xlu1 %v2386_v63, %s1974_s13  ;;  %v842_v63 = vrot.slane %v2415_v24, 1 }
 0x116   : > { %865 = vrot.lane.b32.xlu0 %v2373_v18, %s1974_s13  ;;  %v843_v18 = vrot.slane %v797_v62, 1 }
 0x117   : > { %v819_v14 = vpop.permute.xlu2 %818  ;;  %v827_v3 = vpop.permute.xlu1 %826 }
 0x118   : > { %v811_v56 = vpop.permute.xlu0 %810  ;;  %v2658_v30 = vsel %vm677_vm1, %v842_v63, %v843_v18 }
 0x119   : > { %v1097_v8 = vsel %vm1095_vm6, %v2495_v2, %v811_v56 }
 0x11d   : > { %957 = vrot.lane.b32.xlu2 %v2646_v60, %s1975_s14  ;;  %949 = vrot.lane.b32.xlu1 %v2271_v57, %s1975_s14 }
 0x11e   : > { %910 = vrot.lane.b32.xlu0 %v2415_v24, %s1973_s12 }
 0x11f   : > { %v2654_v43 = vpop.permute.xlu2 %882  ;;  %v870_v19 = vpop.permute.xlu1 %869 }
 0x120   : > { %v862_v59 = vpop.permute.xlu0 %861  ;;  %v1154_v53 = vsel %vm1128_vm7, %v1121_v40, %v870_v19 }
 0x125   : > { %814 = vrot.lane.b32.xlu2 %v2152_v15, %s1972_s11  ;;  %992 = vrot.lane.b32.xlu1 %v2658_v30, %s1976_s21  ;;  %v1080_v15 = vsel %vm1062_vm4, %v2518_v35, %v2593_v13 }
 0x126   : > { %984 = vrot.lane.b32.xlu0 %v2370_v49, %s1976_s21  ;;  %v1113_v9 = vsel %vm1095_vm6, %v1080_v15, %v827_v3 }
 0x127   : > { %v938_v36 = vpop.permute.xlu2 %937  ;;  %v946_v23 = vpop.permute.xlu1 %945  ;;  %v1146_v62 = vsel %vm1128_vm7, %v1113_v9, %v862_v59 }
 0x128   : > { %v907_v24 = vpop.permute.xlu0 %906  ;;  %v1179_v4 = vsel %vm1161_vm8, %v1146_v62, %v2608_v11 }
 0x129   : > { %v1187_v39 = vsel %vm1161_vm8, %v1154_v53, %v907_v24  ;;  %v1212_v13 = vsel %vm1194_vm9, %v1179_v4, %v946_v23 }
 0x12a   : > { %v1220_v47 = vsel %vm1194_vm9, %v1187_v39, %v954_v29 }
 0x12d   : > { %857 = vrot.lane.b32.xlu2 %v2325_v10, %s1974_s13  ;;  %849 = vrot.lane.b32.xlu1 %v2307_v48, %s1974_s13 }
 0x12e   : > { %822 = vrot.lane.b32.xlu0 %v2200_v6, %s1972_s11 }
 0x12f   : > { %v2684_v35 = vpop.permute.xlu2 %828  ;;  %v989_v27 = vpop.permute.xlu1 %988 }
 0x130   : > { %v981_v26 = vpop.permute.xlu0 %980  ;;  %v1253_v10 = vsel %vm1227_vm10, %v1220_v47, %v989_v27 }
 0x131   : > { %v1245_v48 = vsel %vm1227_vm10, %v1212_v13, %v981_v26  ;;  %1782 = vmatmul.msk.bf16.vlgmr.msra.gmra.mxu3 %vm1280_vm11, %v1253_v10 }
 0x132   : > { %1778 = vmatmul.msk.bf16.vlgmr.msra.gmra.mxu2 %vm1280_vm11, %v1245_v48 }
 0x135   : > { %933 = vrot.lane.b32.xlu2 %v2110_v41, %s1975_s14  ;;  %894 = vrot.lane.b32.xlu1 %v2114_v45, %s1973_s12  ;;  %v1105_v45 = vsel %vm1095_vm6, %v2583_v42, %v819_v14  ;;  %v916_v14 = vpack.c.b16 %v915_v58, %v915_v58  ;;  %v3015_v58 = vld [vmem:[#allocation8_spill] sm:$0xff] }
 0x136   : > { %886 = vrot.lane.b32.xlu0 %v2066_v0, %s1973_s12  ;;  %v1808_v0 = vld [vmem:[%s2063_s7 + $0xcc] sm:$0xff] }
 0x137   : > { %v872_v6 = vpop.permute.xlu2 %871  ;;  %v854_v11 = vpop.permute.xlu1 %853  ;;  %v920_v18 = vshll.u32 %v1808_v0, 16  ;;  %v925_v1 = vshll.u32 %v916_v14, 16  ;;  %v962_v39 = vrot.slane %v916_v14, 1 }
 0x138   : > { %v846_v29 = vpop.permute.xlu0 %845  ;;  %v1138_v61 = vsel %vm1128_vm7, %v1105_v45, %v854_v11 }
 0x139   : > { %v1130_v3 = vsel %vm1128_vm7, %v1097_v8, %v846_v29  ;;  %v1888_v29 = vld [vmem:[%s2063_s7 + $0x3c] sm:$0xff] }
 0x13a   : > { %v1163_v2 = vsel %vm1161_vm8, %v1130_v3, %v2654_v43 }
 0x13d   : > { %976 = vrot.lane.b32.xlu2 %v2352_v33, %s1976_s21  ;;  %968 = vrot.lane.b32.xlu1 %v2304_v44, %s1976_s21 }
 0x13e   : > { %941 = vrot.lane.b32.xlu0 %v2190_v54, %s1975_s14 }
 0x13f   : > { %v948_v7 = vpop.permute.xlu2 %947  ;;  %v930_v34 = vpop.permute.xlu1 %929 }
 0x140   : > { %v891_v17 = vpop.permute.xlu0 %890  ;;  %v1196_v59 = vsel %vm1194_vm9, %v1163_v2, %v930_v34  ;;  %v3013_v34 = vld [vmem:[#allocation6_spill] sm:$0xff] }
 0x141   : > { %v1171_v63 = vsel %vm1161_vm8, %v1138_v61, %v891_v17 }
 0x142   : > { %v1204_v19 = vsel %vm1194_vm9, %v1171_v63, %v938_v36  ;;  %v927_v36 = vrot.slane %v925_v1, 1 }
 0x145   : > { %867 = vrot.lane.b32.xlu2 %v2370_v49, %s1974_s13  ;;  %840 = vrot.lane.b32.xlu1 %v2646_v60, %s1972_s11  ;;  %v922_v60 = vrot.slane %v920_v18, 1 }
 0x146   : > { %832 = vrot.lane.b32.xlu0 %v2271_v57, %s1972_s11  ;;  %v918_v57 = vshrl.u32 %v1808_v0, 16 }
 0x147   : > { %v991_v42 = vpop.permute.xlu2 %990  ;;  %v973_v56 = vpop.permute.xlu1 %972 }
 0x148   : > { %v965_v23 = vpop.permute.xlu0 %964  ;;  %v1237_v49 = vsel %vm1227_vm10, %v1204_v19, %v973_v56  ;;  %v923_v43 = vor.u32 %v922_v60, %v918_v57 }
 0x149   : > { %v1229_v24 = vsel %vm1227_vm10, %v1196_v59, %v965_v23  ;;  %1774 = vmatmul.msk.bf16.vlgmr.msra.gmra.mxu1 %vm1280_vm11, %v1237_v49 }
 0x14a   : > { %1770 = vmatmul.msk.bf16.vlgmr.msra.gmra.mxu0 %vm1280_vm11, %v1229_v24  ;;  %v928_v53 = vsel %vm452_vm0, %v923_v43, %v927_v36 }
 0x14d   : > { %912 = vrot.lane.b32.xlu2 %v1808_v0, %s1973_s12  ;;  %904 = vrot.lane.b32.xlu1 %v2210_v20, %s1973_s12  ;;  %v961_v20 = vrot.slane %v1808_v0, 1 }
 0x14e   : > { %875 = vrot.lane.b32.xlu0 %v2658_v30, %s1974_s13  ;;  %v1115_v30 = vsel %vm1095_vm6, %v2547_v37, %v2684_v35 }
 0x14f   : > { %v864_v40 = vpop.permute.xlu1 %863  ;;  %v848_v15 = vpop.permute.xlu2 %847  ;;  %v963_v13 = vsel %vm677_vm1, %v961_v20, %v962_v39 }
 0x150   : > { %v837_v9 = vpop.permute.xlu0 %836  ;;  %v1148_v47 = vsel %vm1128_vm7, %v1115_v30, %v864_v40 }
 0x155   : > { %986 = vrot.lane.b32.xlu2 %v2367_v12, %s1976_s21  ;;  %959 = vrot.lane.b32.xlu1 %v928_v53, %s1975_s14  ;;  %v1123_v12 = vsel %vm1095_vm6, %v2636_v51, %v837_v9 }
 0x156   : > { %951 = vrot.lane.b32.xlu0 %v2268_v55, %s1975_s14  ;;  %v1156_v55 = vsel %vm1128_vm7, %v1123_v12, %v872_v6 }
 0x157   : > { %v909_v62 = vpop.permute.xlu1 %908  ;;  %v893_v27 = vpop.permute.xlu2 %892 }
 0x158   : > { %v901_v4 = vpop.permute.xlu0 %900  ;;  %v1189_v10 = vsel %vm1161_vm8, %v1156_v55, %v909_v62 }
 0x159   : > { %v1181_v26 = vsel %vm1161_vm8, %v1148_v47, %v901_v4 }
 0x15a   : > { %v1214_v35 = vsel %vm1194_vm9, %v1181_v26, %v948_v7 }
 0x15d   : > { %824 = vrot.lane.b32.xlu2 %v2190_v54, %s1972_s11  ;;  %816 = vrot.lane.b32.xlu1 %v2110_v41, %s1972_s11 }
 0x15e   : > { %994 = vrot.lane.b32.xlu0 %v963_v13, %s1976_s21 }
 0x15f   : > { %v983_v37 = vpop.permute.xlu1 %982  ;;  %v967_v41 = vpop.permute.xlu2 %966 }
 0x160   : > { %v956_v48 = vpop.permute.xlu0 %955  ;;  %v1247_v51 = vsel %vm1227_vm10, %v1214_v35, %v983_v37 }
 0x161   : > { %v1222_v11 = vsel %vm1194_vm9, %v1189_v10, %v956_v48  ;;  %1779 = vmatmul.msk.bf16.gmra.mxu2 %vm1280_vm11, %v1247_v51 }
 0x162   : > { %v1255_v54 = vsel %vm1227_vm10, %v1222_v11, %v991_v42 }
 0x163   : > { %1783 = vmatmul.msk.bf16.gmra.mxu3 %vm1280_vm11, %v1255_v54 }
 0x165   : > { %888 = vrot.lane.b32.xlu2 %v1888_v29, %s1973_s12  ;;  %859 = vrot.lane.b32.xlu1 %v2352_v33, %s1974_s13 }
 0x166   : > { %851 = vrot.lane.b32.xlu0 %v2304_v44, %s1974_s13  ;;  %v3016_v44 = vld [vmem:[#allocation7_spill] sm:$0xff] }
 0x167   : > { %v821_v6 = vpop.permute.xlu1 %820  ;;  %v839_v17 = vpop.permute.xlu2 %838 }
 0x168   : > { %v813_v7 = vpop.permute.xlu0 %812  ;;  %v1125_v43 = vsel %vm1095_vm6, %v2632_v32, %v839_v17 }
 0x169   : > { %v1099_v33 = vsel %vm1095_vm6, %v2567_v31, %v813_v7  ;;  %v1107_v31 = vsel %vm1095_vm6, %v2579_v50, %v821_v6 }
 0x16a   : > { %v1132_v8 = vsel %vm1128_vm7, %v1099_v33, %v848_v15 }
 0x16d   : > { %943 = vrot.lane.b32.xlu2 %v3013_v34, %s1975_s14  ;;  %935 = vrot.lane.b32.xlu1 %v3014_v5, %s1975_s14  ;;  %v2828_v34 = vld [vmem:[%s3001_s3] ss:$0 sm:$0xff]  ;;  %s1811_s14 = sshll.u32 %s1959_s18, 8 }
 0x16e   : > { %896 = vrot.lane.b32.xlu0 %v2186_v52, %s1973_s12  ;;  %s1688_s12 = sshll.u32 %s246_s8, 8  ;;  %s1558_s24 = scalar_lea.hbm %s3002_s4, %s1811_s14 }
 0x16f   : > { %v885_v45 = vpop.permute.xlu1 %884  ;;  %v903_v3 = vpop.permute.xlu2 %902  ;;  %s2836_s13 = scalar_lea.vmem [#allocation2], %s1688_s12  ;;  %s1561_s18 = sshll.u32 %s1558_s24, 4  ;;  %s1562_s18 = int_to_ptr.hbm [resolvable:$true] %s1561_s18 }
 0x170   : > { %v856_v0 = vpop.permute.xlu0 %855  ;;  %v1165_v63 = vsel %vm1161_vm8, %v1132_v8, %v885_v45  ;;  %s1559_s26 = sshll.u32 %s2836_s13, 4  ;;  %s1903_s30 = sshra.s32 %s1562_s18, 4  ;;  %s1560_s26 = int_to_ptr.vmem [resolvable:$true] %s1559_s26  ;;  %s1904_s30 = int_to_ptr.hbm [resolvable:$true] %s1903_s30 }
 0x171   : > { %v1140_v18 = vsel %vm1128_vm7, %v1107_v31, %v856_v0  ;;  %s1905_s5 = scalar_lea.hbm %s1904_s30, 256  ;;  %p1910_p1 = scmp.lt.s32.totalorder %s1904_s30, %s3002_s4 }
 0x172   : > { %v1173_v2 = vsel %vm1161_vm8, %v1140_v18, %v893_v27  ;;  %p1906_p12 = scmp.ne.s32.totalorder %s1904_s30, %s1905_s5  ;;  %p1911_p2 = scmp.lt.s32.totalorder %s1909_s10, %s1905_s5 }
 0x174   : > { %p1907_p13 = pnand %p1906_p12, %p2043_p4  ;;  %p1912_p3 = por %p1911_p2, %p1910_p1 }
 0x175   : > { %978 = vrot.lane.b32.xlu1 %v3015_v58, %s1976_s21 }
 0x176   : > { %970 = vrot.lane.b32.xlu0 %v3016_v44, %s1976_s21  ;;  %p1908_p0 = pneg %p1907_p13 }
 0x177   : > { %v940_v61 = vpop.permute.xlu1 %939  ;;  %v958_v49 = vpop.permute.xlu2 %957 }
 0x178   : > { %v932_v42 = vpop.permute.xlu0 %931  ;;  %v1206_v19 = vsel %vm1194_vm9, %v1173_v2, %v940_v61  ;;  %p1913_p5 = pnand %p1912_p3, %p1908_p0 }
 0x179   : > { %v1198_v52 = vsel %vm1194_vm9, %v1165_v63, %v932_v42 }
 0x17a   : > { %v1231_v14 = vsel %vm1227_vm10, %v1198_v52, %v967_v41 }
 0x17b   : > { %1771 = vmatmul.msk.bf16.gmra.mxu0 %vm1280_vm11, %v1231_v14 }
 0x17f   : > { %v831_v56 = vpop.permute.xlu1 %830  ;;  %v815_v60 = vpop.permute.xlu2 %814 }
 0x180   : > { %v975_v59 = vpop.permute.xlu0 %974  ;;  %v1117_v36 = vsel %vm1095_vm6, %v2616_v28, %v831_v56  ;;  %v1101_v55 = vsel %vm1095_vm6, %v2563_v22, %v815_v60 }
 0x181   : > { %v1239_v23 = vsel %vm1227_vm10, %v1206_v19, %v975_v59 }
 0x182   : > { %1775 = vmatmul.msk.bf16.gmra.mxu1 %vm1280_vm11, %v1239_v23 }
 0x187   : > { %v874_v24 = vpop.permute.xlu1 %873  ;;  %v858_v53 = vpop.permute.xlu2 %857 }
 0x188   : > { %v866_v57 = vpop.permute.xlu0 %865  ;;  %v1158_v40 = vsel %vm1128_vm7, %v1125_v43, %v874_v24 }
 0x189   : > { %v1150_v15 = vsel %vm1128_vm7, %v1117_v36, %v866_v57 }
 0x18a   : > { %v1183_v62 = vsel %vm1161_vm8, %v1150_v15, %v903_v3 }
 0x18f   : > { %v950_v1 = vpop.permute.xlu1 %949  ;;  %v934_v47 = vpop.permute.xlu2 %933 }
 0x190   : > { %v911_v50 = vpop.permute.xlu0 %910  ;;  %v1216_v4 = vsel %vm1194_vm9, %v1183_v62, %v950_v1 }
 0x191   : > { %v1191_v9 = vsel %vm1161_vm8, %v1158_v40, %v911_v50 }
 0x192   : > { %v1224_v39 = vsel %vm1194_vm9, %v1191_v9, %v958_v49 }
 0x197   : > { %v993_v20 = vpop.permute.xlu1 %992  ;;  %v977_v37 = vpop.permute.xlu2 %976 }
 0x198   : > { %v985_v30 = vpop.permute.xlu0 %984  ;;  %v1257_v32 = vsel %vm1227_vm10, %v1224_v39, %v993_v20 }
 0x199   : > { %v1249_v27 = vsel %vm1227_vm10, %v1216_v4, %v985_v30  ;;  %1784 = vmatmul.msk.bf16.gmra.mxu3 %vm1280_vm11, %v1257_v32 }
 0x19a   : > { %1780 = vmatmul.msk.bf16.gmra.mxu2 %vm1280_vm11, %v1249_v27 }
 0x19f   : > { %v850_v28 = vpop.permute.xlu1 %849  ;;  %v868_v5 = vpop.permute.xlu2 %867 }
 0x1a0   : > { %v823_v13 = vpop.permute.xlu0 %822  ;;  %v1134_v35 = vsel %vm1128_vm7, %v1101_v55, %v850_v28 }
 0x1a1   : > { %v1109_v10 = vsel %vm1095_vm6, %v2529_v25, %v823_v13  ;;  %v2820_v25 = vld [vmem:[%s3000_s2] ss:$0 sm:$0xff] }
 0x1a2   : > { %v1142_v51 = vsel %vm1128_vm7, %v1109_v10, %v858_v53 }
 0x1a7   : > { %v895_v12 = vpop.permute.xlu1 %894  ;;  %v913_v31 = vpop.permute.xlu2 %912 }
 0x1a8   : > { %v887_v26 = vpop.permute.xlu0 %886  ;;  %v1175_v41 = vsel %vm1161_vm8, %v1142_v51, %v895_v12 }
 0x1a9   : > { %v1167_v48 = vsel %vm1161_vm8, %v1134_v35, %v887_v26 }
 0x1aa   : > { %v1200_v54 = vsel %vm1194_vm9, %v1167_v48, %v934_v47 }
 0x1af   : > { %v969_v11 = vpop.permute.xlu1 %968  ;;  %v987_v36 = vpop.permute.xlu2 %986 }
 0x1b0   : > { %v942_v29 = vpop.permute.xlu0 %941  ;;  %v1233_v6 = vsel %vm1227_vm10, %v1200_v54, %v969_v11 }
 0x1b1   : > { %v1208_v22 = vsel %vm1194_vm9, %v1175_v41, %v942_v29  ;;  %1772 = vmatmul.msk.bf16.gmra.mxu0 %vm1280_vm11, %v1233_v6 }
 0x1b2   : > { %v1241_v7 = vsel %vm1227_vm10, %v1208_v22, %v977_v37 }
 0x1b3   : > { %1776 = vmatmul.msk.bf16.gmra.mxu1 %vm1280_vm11, %v1241_v7 }
 0x1b4   : > { %v1386_v17 = vpop.f32.mrf.mxu3 }
 0x1b5   : > { %v1366_v45 = vpop.f32.mrf.mxu2  ;;  %v1434_v0 = vmul.f32 %v2820_v25, %v1386_v17 }
 0x1b6   : > { %v1426_v33 = vmul.f32 %v2820_v25, %v1366_v45 }
 0x1b7   : > { %v1470_v58 = vadd.f32 %v2828_v34, %v1434_v0  ;;  %v841_v44 = vpop.permute.xlu1 %840  ;;  %v825_v10 = vpop.permute.xlu2 %824 }
 0x1b8   : > { %v1462_v8 = vadd.f32 %v2828_v34, %v1426_v33  ;;  %v833_v61 = vpop.permute.xlu0 %832  ;;  %v1127_v39 = vsel %vm1095_vm6, %v2576_v46, %v841_v44  ;;  %v1111_v7 = vsel %vm1095_vm6, %v2597_v21, %v825_v10 }
 0x1b9   : > { %v1502_v3 = vmax.f32 %v1470_v58, 0.0  ;;  %v1119_v24 = vsel %vm1095_vm6, %v2612_v38, %v833_v61 }
 0x1ba   : > { %v1494_v63 = vmax.f32 %v1462_v8, 0.0  ;;  %v1152_v60 = vsel %vm1128_vm7, %v1119_v24, %v868_v5 }
 0x1bb   : > { %1534 = vst [vmem:[%s2836_s13 + $0xc0] sm:$0xff] %v1502_v3 }
 0x1bc   : > { %1526 = vst [vmem:[%s2836_s13 + $0x80] sm:$0xff] %v1494_v63  ;;  %v1388_v42 = vpop.f32.mrf.mxu3 }
 0x1bd   : > { %v1368_v52 = vpop.f32.mrf.mxu2  ;;  %v1435_v14 = vmul.f32 %v2820_v25, %v1388_v42 }
 0x1be   : > { %v1427_v18 = vmul.f32 %v2820_v25, %v1368_v52 }
 0x1bf   : > { %v1471_v2 = vadd.f32 %v2828_v34, %v1435_v14  ;;  %v905_v56 = vpop.permute.xlu1 %904  ;;  %v889_v29 = vpop.permute.xlu2 %888 }
 0x1c0   : > { %v1463_v19 = vadd.f32 %v2828_v34, %v1427_v18  ;;  %v876_v59 = vpop.permute.xlu0 %875  ;;  %v1185_v40 = vsel %vm1161_vm8, %v1152_v60, %v905_v56 }
 0x1c1   : > { %v1503_v23 = vmax.f32 %v1471_v2, 0.0  ;;  %v1160_v30 = vsel %vm1128_vm7, %v1127_v39, %v876_v59 }
 0x1c2   : > { %v1495_v49 = vmax.f32 %v1463_v19, 0.0  ;;  %v1193_v28 = vsel %vm1161_vm8, %v1160_v30, %v913_v31 }
 0x1c3   : > { %1535 = vst [vmem:[%s2836_s13 + $0xc8] sm:$0xff] %v1503_v23 }
 0x1c4   : > { %1527 = vst [vmem:[%s2836_s13 + $0x88] sm:$0xff] %v1495_v49 }
 0x1c6   : > { %v1346_v57 = vpop.f32.mrf.mxu1 }
 0x1c7   : > { %v1326_v1 = vpop.f32.mrf.mxu0  ;;  %v1418_v50 = vmul.f32 %v2820_v25, %v1346_v57  ;;  %v960_v43 = vpop.permute.xlu1 %959 }
 0x1c8   : > { %v1410_v15 = vmul.f32 %v2820_v25, %v1326_v1  ;;  %v952_v9 = vpop.permute.xlu0 %951  ;;  %v1226_v26 = vsel %vm1194_vm9, %v1193_v28, %v960_v43  ;;  %v944_v33 = vpop.permute.xlu2 %943 }
 0x1c9   : > { %v1454_v53 = vadd.f32 %v2828_v34, %v1418_v50  ;;  %v1218_v38 = vsel %vm1194_vm9, %v1185_v40, %v952_v9 }
 0x1ca   : > { %v1446_v62 = vadd.f32 %v2828_v34, %v1410_v15  ;;  %v1251_v20 = vsel %vm1227_vm10, %v1218_v38, %v987_v36 }
 0x1cb   : > { %v1486_v4 = vmax.f32 %v1454_v53, 0.0  ;;  %1781 = vmatmul.msk.bf16.gmra.mxu2 %vm1280_vm11, %v1251_v20 }
 0x1cc   : > { %v1478_v32 = vmax.f32 %v1446_v62, 0.0 }
 0x1cd   : > { %1518 = vst [vmem:[%s2836_s13 + $0x40] sm:$0xff] %v1486_v4 }
 0x1ce   : > { %1510 = vst [vmem:[%s2836_s13] sm:$0xff] %v1478_v32  ;;  %v1348_v27 = vpop.f32.mrf.mxu1 }
 0x1cf   : > { %v1328_v47 = vpop.f32.mrf.mxu0  ;;  %v1419_v13 = vmul.f32 %v2820_v25, %v1348_v27  ;;  %v817_v12 = vpop.permute.xlu1 %816 }
 0x1d0   : > { %v1411_v46 = vmul.f32 %v2820_v25, %v1328_v47  ;;  %v995_v55 = vpop.permute.xlu0 %994  ;;  %v1103_v5 = vsel %vm1095_vm6, %v2511_v16, %v817_v12 }
 0x1d1   : > { %v1455_v37 = vadd.f32 %v2828_v34, %v1419_v13  ;;  %v1259_v35 = vsel %vm1227_vm10, %v1226_v26, %v995_v55 }
 0x1d2   : > { %v1447_v48 = vadd.f32 %v2828_v34, %v1411_v46  ;;  %1785 = vmatmul.msk.bf16.gmra.mxu3 %vm1280_vm11, %v1259_v35 }
 0x1d3   : > { %v1487_v51 = vmax.f32 %v1455_v37, 0.0 }
 0x1d4   : > { %v1479_v11 = vmax.f32 %v1447_v48, 0.0 }
 0x1d5   : > { %1519 = vst [vmem:[%s2836_s13 + $0x48] sm:$0xff] %v1487_v51 }
 0x1d6   : > { %1511 = vst [vmem:[%s2836_s13 + $0x8] sm:$0xff] %v1479_v11 }
 0x1d7   : > { %v860_v54 = vpop.permute.xlu1 %859 }
 0x1d8   : > { %v852_v41 = vpop.permute.xlu0 %851  ;;  %v1144_v17 = vsel %vm1128_vm7, %v1111_v7, %v860_v54 }
 0x1d9   : > { %v1136_v45 = vsel %vm1128_vm7, %v1103_v5, %v852_v41 }
 0x1da   : > { %v1169_v61 = vsel %vm1161_vm8, %v1136_v45, %v889_v29 }
 0x1df   : > { %v936_v6 = vpop.permute.xlu1 %935 }
 0x1e0   : > { %v897_v22 = vpop.permute.xlu0 %896  ;;  %v1202_v42 = vsel %vm1194_vm9, %v1169_v61, %v936_v6 }
 0x1e1   : > { %v1177_v0 = vsel %vm1161_vm8, %v1144_v17, %v897_v22 }
 0x1e2   : > { %v1210_v21 = vsel %vm1194_vm9, %v1177_v0, %v944_v33 }
 0x1e4   : > { %v1371_v58 = vpop.f32.mrf.mxu2 }
 0x1e5   : > { %v1428_v44 = vmul.f32 %v2820_v25, %v1371_v58 }
 0x1e6   : > { %v1391_v8 = vpop.f32.mrf.mxu3 }
 0x1e7   : > { %v1464_v3 = vadd.f32 %v2828_v34, %v1428_v44  ;;  %v1436_v16 = vmul.f32 %v2820_v25, %v1391_v8  ;;  %v979_v63 = vpop.permute.xlu1 %978 }
 0x1e8   : > { %v971_v52 = vpop.permute.xlu0 %970  ;;  %v1243_v14 = vsel %vm1227_vm10, %v1210_v21, %v979_v63 }
 0x1e9   : > { %v1496_v31 = vmax.f32 %v1464_v3, 0.0  ;;  %v1472_v18 = vadd.f32 %v2828_v34, %v1436_v16  ;;  %v1235_v2 = vsel %vm1227_vm10, %v1202_v42, %v971_v52  ;;  %1777 = vmatmul.msk.bf16.gmra.mxu1 %vm1280_vm11, %v1243_v14 }
 0x1ea   : > { %1773 = vmatmul.msk.bf16.gmra.mxu0 %vm1280_vm11, %v1235_v2 }
 0x1eb   : > { %1528 = vst [vmem:[%s2836_s13 + $0x90] sm:$0xff] %v1496_v31  ;;  %v1504_v56 = vmax.f32 %v1472_v18, 0.0 }
 0x1ec   : > { %v1373_v19 = vpop.f32.mrf.mxu2 }
 0x1ed   : > { %1536 = vst [vmem:[%s2836_s13 + $0xd0] sm:$0xff] %v1504_v56  ;;  %v1429_v59 = vmul.f32 %v2820_v25, %v1373_v19 }
 0x1ee   : > { %v1393_v23 = vpop.f32.mrf.mxu3 }
 0x1ef   : > { %v1465_v49 = vadd.f32 %v2828_v34, %v1429_v59  ;;  %v1437_v24 = vmul.f32 %v2820_v25, %v1393_v23 }
 0x1f1   : > { %v1497_v57 = vmax.f32 %v1465_v49, 0.0  ;;  %v1473_v60 = vadd.f32 %v2828_v34, %v1437_v24 }
 0x1f3   : > { %1529 = vst [vmem:[%s2836_s13 + $0x98] sm:$0xff] %v1497_v57  ;;  %v1505_v1 = vmax.f32 %v1473_v60, 0.0 }
 0x1f5   : > { %1537 = vst [vmem:[%s2836_s13 + $0xd8] sm:$0xff] %v1505_v1 }
 0x1f8   : > { %v1331_v50 = vpop.f32.mrf.mxu0 }
 0x1f9   : > { %v1412_v43 = vmul.f32 %v2820_v25, %v1331_v50 }
 0x1fb   : > { %v1448_v36 = vadd.f32 %v2828_v34, %v1412_v43 }
 0x1fd   : > { %v1480_v40 = vmax.f32 %v1448_v36, 0.0 }
 0x1ff   : > { %1512 = vst [vmem:[%s2836_s13 + $0x10] sm:$0xff] %v1480_v40  ;;  %v1351_v15 = vpop.f32.mrf.mxu1 }
 0x200   : > { %v1420_v9 = vmul.f32 %v2820_v25, %v1351_v15  ;;  %v1333_v53 = vpop.f32.mrf.mxu0 }
 0x201   : > { %v1413_v38 = vmul.f32 %v2820_v25, %v1333_v53 }
 0x202   : > { %v1456_v62 = vadd.f32 %v2828_v34, %v1420_v9 }
 0x203   : > { %v1449_v20 = vadd.f32 %v2828_v34, %v1413_v38 }
 0x204   : > { %v1488_v39 = vmax.f32 %v1456_v62, 0.0 }
 0x205   : > { %v1481_v4 = vmax.f32 %v1449_v20, 0.0 }
 0x206   : > { %1520 = vst [vmem:[%s2836_s13 + $0x50] sm:$0xff] %v1488_v39 }
 0x207   : > { %1513 = vst [vmem:[%s2836_s13 + $0x18] sm:$0xff] %v1481_v4  ;;  %v1353_v30 = vpop.f32.mrf.mxu1 }
 0x208   : > { %v1421_v32 = vmul.f32 %v2820_v25, %v1353_v30 }
 0x20a   : > { %v1457_v27 = vadd.f32 %v2828_v34, %v1421_v32 }
 0x20c   : > { %v1489_v28 = vmax.f32 %v1457_v27, 0.0 }
 0x20e   : > { %1521 = vst [vmem:[%s2836_s13 + $0x58] sm:$0xff] %v1489_v28 }
 0x21c   : > { %v1396_v47 = vpop.f32.mrf.mxu3 }
 0x21d   : > { %v1376_v13 = vpop.f32.mrf.mxu2  ;;  %v1438_v12 = vmul.f32 %v2820_v25, %v1396_v47 }
 0x21e   : > { %v1430_v26 = vmul.f32 %v2820_v25, %v1376_v13 }
 0x21f   : > { %v1474_v46 = vadd.f32 %v2828_v34, %v1438_v12 }
 0x220   : > { %v1466_v55 = vadd.f32 %v2828_v34, %v1430_v26 }
 0x221   : > { %v1506_v37 = vmax.f32 %v1474_v46, 0.0 }
 0x222   : > { %v1498_v35 = vmax.f32 %v1466_v55, 0.0 }
 0x223   : > { %1538 = vst [vmem:[%s2836_s13 + $0xe0] sm:$0xff] %v1506_v37 }
 0x224   : > { %1530 = vst [vmem:[%s2836_s13 + $0xa0] sm:$0xff] %v1498_v35  ;;  %v1398_v10 = vpop.f32.mrf.mxu3 }
 0x225   : > { %v1378_v48 = vpop.f32.mrf.mxu2  ;;  %v1439_v51 = vmul.f32 %v2820_v25, %v1398_v10 }
 0x226   : > { %v1431_v11 = vmul.f32 %v2820_v25, %v1378_v48 }
 0x227   : > { %v1475_v54 = vadd.f32 %v2828_v34, %v1439_v51 }
 0x228   : > { %v1467_v41 = vadd.f32 %v2828_v34, %v1431_v11 }
 0x229   : > { %v1507_v29 = vmax.f32 %v1475_v54, 0.0 }
 0x22a   : > { %v1499_v6 = vmax.f32 %v1467_v41, 0.0 }
 0x22b   : > { %1539 = vst [vmem:[%s2836_s13 + $0xe8] sm:$0xff] %v1507_v29 }
 0x22c   : > { %1531 = vst [vmem:[%s2836_s13 + $0xa8] sm:$0xff] %v1499_v6 }
 0x22e   : > { %v1336_v22 = vpop.f32.mrf.mxu0 }
 0x22f   : > { %v1414_v7 = vmul.f32 %v2820_v25, %v1336_v22 }
 0x230   : > { %v1356_v5 = vpop.f32.mrf.mxu1 }
 0x231   : > { %v1450_v17 = vadd.f32 %v2828_v34, %v1414_v7  ;;  %v1422_v45 = vmul.f32 %v2820_v25, %v1356_v5 }
 0x233   : > { %v1482_v0 = vmax.f32 %v1450_v17, 0.0  ;;  %v1458_v33 = vadd.f32 %v2828_v34, %v1422_v45 }
 0x235   : > { %1514 = vst [vmem:[%s2836_s13 + $0x20] sm:$0xff] %v1482_v0  ;;  %v1490_v58 = vmax.f32 %v1458_v33, 0.0 }
 0x236   : > { %v1338_v44 = vpop.f32.mrf.mxu0 }
 0x237   : > { %1522 = vst [vmem:[%s2836_s13 + $0x60] sm:$0xff] %v1490_v58  ;;  %v1415_v8 = vmul.f32 %v2820_v25, %v1338_v44 }
 0x238   : > { %v1358_v61 = vpop.f32.mrf.mxu1 }
 0x239   : > { %v1451_v21 = vadd.f32 %v2828_v34, %v1415_v8  ;;  %v1423_v3 = vmul.f32 %v2820_v25, %v1358_v61 }
 0x23b   : > { %v1483_v16 = vmax.f32 %v1451_v21, 0.0  ;;  %v1459_v63 = vadd.f32 %v2828_v34, %v1423_v3 }
 0x23d   : > { %1515 = vst [vmem:[%s2836_s13 + $0x28] sm:$0xff] %v1483_v16  ;;  %v1491_v42 = vmax.f32 %v1459_v63, 0.0 }
 0x23f   : > { %1523 = vst [vmem:[%s2836_s13 + $0x68] sm:$0xff] %v1491_v42 }
 0x24e   : > { %v1381_v52 = vpop.f32.mrf.mxu2 }
 0x24f   : > { %v1432_v14 = vmul.f32 %v2820_v25, %v1381_v52 }
 0x251   : > { %v1468_v31 = vadd.f32 %v2828_v34, %v1432_v14 }
 0x253   : > { %v1500_v18 = vmax.f32 %v1468_v31, 0.0 }
 0x255   : > { %1532 = vst [vmem:[%s2836_s13 + $0xb0] sm:$0xff] %v1500_v18  ;;  %v1401_v2 = vpop.f32.mrf.mxu3 }
 0x256   : > { %v1440_v56 = vmul.f32 %v2820_v25, %v1401_v2  ;;  %v1383_v19 = vpop.f32.mrf.mxu2 }
 0x257   : > { %v1433_v59 = vmul.f32 %v2820_v25, %v1383_v19 }
 0x258   : > { %v1476_v23 = vadd.f32 %v2828_v34, %v1440_v56 }
 0x259   : > { %v1469_v49 = vadd.f32 %v2828_v34, %v1433_v59 }
 0x25a   : > { %v1508_v24 = vmax.f32 %v1476_v23, 0.0 }
 0x25b   : > { %v1501_v57 = vmax.f32 %v1469_v49, 0.0 }
 0x25c   : > { %1540 = vst [vmem:[%s2836_s13 + $0xf0] sm:$0xff] %v1508_v24 }
 0x25d   : > { %1533 = vst [vmem:[%s2836_s13 + $0xb8] sm:$0xff] %v1501_v57  ;;  %v1403_v60 = vpop.f32.mrf.mxu3 }
 0x25e   : > { %v1441_v1 = vmul.f32 %v2820_v25, %v1403_v60 }
 0x260   : > { %v1477_v50 = vadd.f32 %v2828_v34, %v1441_v1 }
 0x262   : > { %v1509_v43 = vmax.f32 %v1477_v50, 0.0 }
 0x264   : > { %1541 = vst [vmem:[%s2836_s13 + $0xf8] sm:$0xff] %v1509_v43 }
 0x266   : > { %v1361_v36 = vpop.f32.mrf.mxu1 }
 0x267   : > { %v1341_v40 = vpop.f32.mrf.mxu0  ;;  %v1424_v15 = vmul.f32 %v2820_v25, %v1361_v36 }
 0x268   : > { %v1416_v9 = vmul.f32 %v2820_v25, %v1341_v40 }
 0x269   : > { %v1460_v53 = vadd.f32 %v2828_v34, %v1424_v15 }
 0x26a   : > { %v1452_v38 = vadd.f32 %v2828_v34, %v1416_v9 }
 0x26b   : > { %v1492_v62 = vmax.f32 %v1460_v53, 0.0 }
 0x26c   : > { %v1484_v20 = vmax.f32 %v1452_v38, 0.0 }
 0x26d   : > { %1524 = vst [vmem:[%s2836_s13 + $0x70] sm:$0xff] %v1492_v62 }
 0x26e   : > { %1516 = vst [vmem:[%s2836_s13 + $0x30] sm:$0xff] %v1484_v20  ;;  %v1363_v39 = vpop.f32.mrf.mxu1 }
 0x26f   : > { %v1343_v4 = vpop.f32.mrf.mxu0  ;;  %v1425_v30 = vmul.f32 %v2820_v25, %v1363_v39 }
 0x270   : > { %v1417_v32 = vmul.f32 %v2820_v25, %v1343_v4 }
 0x271   : > { %v1461_v27 = vadd.f32 %v2828_v34, %v1425_v30 }
 0x272   : > { %v1453_v28 = vadd.f32 %v2828_v34, %v1417_v32 }
 0x273   : > { %v1493_v47 = vmax.f32 %v1461_v27, 0.0 }
 0x274   : > { %v1485_v13 = vmax.f32 %v1453_v28, 0.0 }
 0x275   : > { %1525 = vst [vmem:[%s2836_s13 + $0x78] sm:$0xff] %v1493_v47 }
 0x276   : > { %1517 = vst [vmem:[%s2836_s13 + $0x38] sm:$0xff] %v1485_v13 }
 0x277   : > { %1916 = shalt.err (!%p1913_p5)
}
 0x278   : > { %s1977_s8 = smov 128  }
 0x279   : > { %1822 = dma.vmem_to_hbm [thread:$0]  (%p2043_p4), %s1560_s26, 4096, %s1562_s18, %s1543_s29, %s1977_s8, %s1977_s8, %s1970_s9  }
 0x27a PF: > { %p1828_p6 = scmp.ge.s32.totalorder %s1967_s20, 2  ;;  %s1576_s13 = sand.u32 1, %s1947_s15  }
 0x27b   : > { %s1577_s14 = scalar_lea.sflag [#allocation3], %s1576_s13 }
 0x27c   : > { %p1825_p7 = pnand %p1828_p6, %p2050_p8 }
 0x27e   : > { %p1826_p9 = pneg %p1825_p7 }
 0x280   : > { %1942 = dma.done.wait (%p1826_p9), %s1577_s14, 4096  }
 0x281   : > { %1944 = vsyncadd (%p1826_p9), %s1577_s14, 4294963200  ;;  %s17_s20 = sadd.s32 1, %s1967_s20   ;;  %s3017_s15 = smov %s1951_s16 }
 0x282   : > { %p14_p10 = scmp.ge.s32.totalorder %s17_s20, 4   ;;  %s3018_s16 = smov %s1955_s17 }
 0x283   : > { %s3019_s17 = smov %s2056_s28  ;;  %s3020_s18 = smov %s1963_s19 }
 0x284   : > { %s3021_s19 = smov %s3023_s23  ;;  %16 = sbr.rel (!%p14_p10) target bundleno = 4 (0x4), region = 81 }
 0x289   :  { %1583 = vsyncpa [#allocation3], 1 }
 0x28a   :  { %1585 = vsyncpa [#allocation3 + $0x1], 1 }

</bundles_post_ra>
